<compile_context>
chip_gen: v6e
topology: v6e:2x2x1
jax: 0.10.0
libtpu: 0.0.40
codegen_flags: <defaults>
</compile_context>

<pallas_src>
import functools

import jax
import jax.numpy as jnp
from jax.experimental import pallas as pl
from jax.experimental.pallas import tpu as pltpu


def _round_up(x, m):
    return (x + m - 1) // m * m


# ----------------------------------------------------------------------------
# Layout helpers (cheap XLA glue around the fused kernel)
# ----------------------------------------------------------------------------
def pack_stored(x, margin):
    """(C,H,W) -> (C,L): zero-pad 1px border, flatten, add `margin` zero lanes."""
    c, h, w = x.shape
    xp = jnp.pad(x, ((0, 0), (1, 1), (1, 1))).reshape(c, (h + 2) * (w + 2))
    return jnp.pad(xp, ((0, 0), (margin, margin)))


def unpack_stored(xs, h, w, margin):
    hp, wp = h + 2, w + 2
    body = xs[:, margin:margin + hp * wp].reshape(-1, hp, wp)
    return body[:, 1:h + 1, 1:w + 1]


def interior_flat_mask(h, w):
    """(1,(h+2)*(w+2)) mask: 1 at interior pixels of the padded flat layout."""
    hp, wp = h + 2, w + 2
    m = jnp.zeros((hp, wp), jnp.float32).at[1:h + 1, 1:w + 1].set(1.0)
    return m.reshape(1, hp * wp)


def stored_mask(h, w, margin):
    """(1,L) mask over the stored layout (zeros at pads + margins)."""
    return jnp.pad(interior_flat_mask(h, w), ((0, 0), (margin, margin)))


def pad_flat_target(f):
    """(C,H,W) content-feature target -> (C,(H+2)*(W+2)) with zero border."""
    c = f.shape[0]
    return jnp.pad(f, ((0, 0), (1, 1), (1, 1))).reshape(c, -1)


def pack_conv_params(w, b):
    """(Cout,Cin,3,3),(Cout,) -> stacked-tap (Cout,9*Cin) bf16 and (Cout,1) f32.

    Column order matches the in-kernel tap slab: col = (dy*3+dx)*Cin + cin.
    """
    cout, cin = w.shape[0], w.shape[1]
    wp = jnp.transpose(w, (0, 2, 3, 1)).reshape(cout, 9 * cin)
    return wp.astype(jnp.bfloat16), b.reshape(cout, 1).astype(jnp.float32)


def pool_select_matrix(w):
    """(W, W//2) 0/1 matrix selecting every even lane (horizontal 2:1 compaction)."""
    wh = w // 2
    sel = jnp.zeros((w, wh), jnp.float32)
    sel = sel.at[2 * jnp.arange(wh), jnp.arange(wh)].set(1.0)
    return sel.astype(jnp.bfloat16)


def bilinear_half(x):
    # F.interpolate(scale_factor=0.5, mode='bilinear', align_corners=False) is
    # exactly 2x2 average pooling at this scale.
    c, h, w = x.shape
    return x.reshape(c, h // 2, 2, w // 2, 2).mean(axis=(2, 4))


# ----------------------------------------------------------------------------
# Fused Pallas kernel: both resolutions in one launch
# ----------------------------------------------------------------------------
def _fused_neural_style_kernel(
        x_ref, mask_ref, mask_h_ref, sel_ref,
        w1_ref, b1_ref, w2_ref, b2_ref,
        t2f_ref, tg1f_ref, tg2f_ref, t2h_ref, tg1h_ref, tg2h_ref,
        img_ref, cf_ref, sf_ref, ch_ref, sh_ref,
        imgh_ref, f1f_ref, f1h_ref,
        slab1f_ref, slab2f_ref, slab1h_ref, slab2h_ref,
        *, H, W, margin):
    Hp, Wp = H + 2, W + 2
    npad = Hp * Wp
    Hh, Wh = H // 2, W // 2
    Hph, Wph = Hh + 2, Wh + 2
    npad_h = Hph * Wph
    hw = float(H * W)
    hwh = float(Hh * Wh)
    c1 = w1_ref.shape[0]
    c2 = w2_ref.shape[0]
    Lf = npad + 2 * margin
    Lh = npad_h + 2 * margin

    # ParameterizedImg: sigmoid squashing of the raw canvas params.  The mask
    # keeps the 1px zero padding and the margin lanes at exact zero
    # (sigmoid(0) would otherwise be 0.5).
    img_ref[...] = jax.nn.sigmoid(x_ref[...]) * mask_ref[...]

    interior_f = mask_ref[:, pl.ds(margin, npad)]        # (1, npad)
    interior_h = mask_h_ref[...]                          # (1, npad_h)

    def conv3x3_relu(src_ref, slab_ref, w_ref, b_ref, interior, wp_x, npad_x):
        # 3x3 "same" conv: 9 shifted lane-window reads staged into a stacked
        # (9*Cin, npad) tap slab, then ONE bf16 MXU matmul with K = 9*Cin
        # (instead of 9 K=Cin matmuls + VPU accumulation of partial sums).
        cin = src_ref.shape[0]
        for dy in range(3):
            for dx in range(3):
                t = dy * 3 + dx
                start = margin + (dy - 1) * wp_x + (dx - 1)
                slab_ref[t * cin:(t + 1) * cin, :] = src_ref[:, pl.ds(start, npad_x)]
        acc = jnp.dot(w_ref[...], slab_ref[...].astype(jnp.bfloat16),
                      preferred_element_type=jnp.float32)
        # Bias + ReLU in f32; interior mask re-zeroes pad columns so the
        # output can serve as the next layer's zero padding / Gram input.
        return jnp.maximum(acc + b_ref[...], 0.0) * interior

    def gram(f_bf, c, hw_x):
        # Gram via dot_general contracting on the pixel axis (no transpose);
        # zeroed pad columns contribute nothing.  Normalized by C*H*W.
        dn = (((1,), (1,)), ((), ()))
        g = jax.lax.dot_general(f_bf, f_bf, dn, preferred_element_type=jnp.float32)
        return g / (c * hw_x)

    def losses(f1, f2, t2_ref, tg1_ref, tg2_ref, hw_x):
        dc = f2 - t2_ref[...]
        content = jnp.sum(dc * dc) / (c2 * hw_x)
        d1 = gram(f1.astype(jnp.bfloat16), c1, hw_x) - tg1_ref[...]
        d2 = gram(f2.astype(jnp.bfloat16), c2, hw_x) - tg2_ref[...]
        style = jnp.mean(d1 * d1) + jnp.mean(d2 * d2)
        return content, style

    # ------------------------------ full resolution --------------------------
    f1 = conv3x3_relu(img_ref, slab1f_ref, w1_ref, b1_ref, interior_f, Wp, npad)
    # Stage f1 in stored layout for conv2's shifted tap reads.  Only the two
    # margin regions need zeroing (once); the interior is fully overwritten.
    f1f_ref[:, pl.ds(0, margin)] = jnp.zeros((c1, margin), jnp.float32)
    f1f_ref[:, pl.ds(margin + npad, Lf - margin - npad)] = jnp.zeros(
        (c1, Lf - margin - npad), jnp.float32)
    f1f_ref[:, pl.ds(margin, npad)] = f1
    f2 = conv3x3_relu(f1f_ref, slab2f_ref, w2_ref, b2_ref, interior_f, Wp, npad)
    c_full, s_full = losses(f1, f2, t2f_ref, tg1f_ref, tg2f_ref, hw)

    # ------------------------- half resolution (fused) -----------------------
    # bilinear 0.5x (align_corners=False) == 2x2 average pooling.  Vertical +
    # horizontal pair sums use contiguous shifted reads of the stored image;
    # the 2:1 horizontal compaction is a tiny MXU matmul with a 0/1 selection
    # matrix (no strided lane gathers).
    imgh_ref[...] = jnp.zeros(imgh_ref.shape, jnp.float32)
    for yh in range(Hh):
        r0 = margin + (2 * yh + 1) * Wp + 1
        vsum = (img_ref[:, pl.ds(r0, W)] + img_ref[:, pl.ds(r0 + 1, W)] +
                img_ref[:, pl.ds(r0 + Wp, W)] + img_ref[:, pl.ds(r0 + Wp + 1, W)])
        pooled = jnp.dot((0.25 * vsum).astype(jnp.bfloat16), sel_ref[...],
                         preferred_element_type=jnp.float32)          # (3, Wh)
        imgh_ref[:, pl.ds(margin + (yh + 1) * Wph + 1, Wh)] = pooled

    f1h = conv3x3_relu(imgh_ref, slab1h_ref, w1_ref, b1_ref, interior_h, Wph, npad_h)
    f1h_ref[:, pl.ds(0, margin)] = jnp.zeros((c1, margin), jnp.float32)
    f1h_ref[:, pl.ds(margin + npad_h, Lh - margin - npad_h)] = jnp.zeros(
        (c1, Lh - margin - npad_h), jnp.float32)
    f1h_ref[:, pl.ds(margin, npad_h)] = f1h
    f2h = conv3x3_relu(f1h_ref, slab2h_ref, w2_ref, b2_ref, interior_h, Wph, npad_h)
    c_half, s_half = losses(f1h, f2h, t2h_ref, tg1h_ref, tg2h_ref, hwh)

    cf_ref[...] = c_full.reshape(1, 1)
    sf_ref[...] = s_full.reshape(1, 1)
    ch_ref[...] = c_half.reshape(1, 1)
    sh_ref[...] = s_half.reshape(1, 1)


def fused_neural_style(x_stored, mask_full, mask_half, sel, w1, b1, w2, b2,
                       t2_full, tg1_full, tg2_full, t2_half, tg1_half, tg2_half,
                       *, H, W, margin):
    """One pallas_call computing (img_stored, c_full, s_full, c_half, s_half)."""
    c_img, L = x_stored.shape
    c1 = w1.shape[0]
    npad = (H + 2) * (W + 2)
    Hh, Wh = H // 2, W // 2
    npad_h = (Hh + 2) * (Wh + 2)
    Lh = npad_h + 2 * margin

    scratch_defs = [
        ((c_img, Lh), jnp.float32),          # pooled half-res image, stored layout
        ((c1, L), jnp.float32),              # f1 full-res, stored layout
        ((c1, Lh), jnp.float32),             # f1 half-res, stored layout
        ((9 * c_img, npad), jnp.float32),    # conv1 tap slab, full res
        ((9 * c1, npad), jnp.float32),       # conv2 tap slab, full res
        ((9 * c_img, npad_h), jnp.float32),  # conv1 tap slab, half res
        ((9 * c1, npad_h), jnp.float32),     # conv2 tap slab, half res
    ]
    out_defs = [
        ((c_img, L), jnp.float32),   # image, stored layout
        ((1, 1), jnp.float32),       # content loss, full res
        ((1, 1), jnp.float32),       # style loss, full res
        ((1, 1), jnp.float32),       # content loss, half res
        ((1, 1), jnp.float32),       # style loss, half res
    ]
    args = (x_stored, mask_full, mask_half, sel, w1, b1, w2, b2,
            t2_full, tg1_full, tg2_full, t2_half, tg1_half, tg2_half)

    def nbytes(shape, dtype):
        n = 1
        for d in shape:
            n *= int(d)
        return n * jnp.dtype(dtype).itemsize

    # Explicit VMEM budget sized from the actual buffers, with generous
    # headroom for in-kernel temporaries / vreg spills.
    buf_bytes = (sum(nbytes(a.shape, a.dtype) for a in args)
                 + sum(nbytes(s, d) for s, d in out_defs)
                 + sum(nbytes(s, d) for s, d in scratch_defs))
    vmem_limit = int(min(100 * 2 ** 20, max(16 * 2 ** 20, 8 * buf_bytes)))

    kernel = functools.partial(_fused_neural_style_kernel, H=H, W=W, margin=margin)
    img_s, c_f, s_f, c_h, s_h = pl.pallas_call(
        kernel,
        out_shape=tuple(jax.ShapeDtypeStruct(s, d) for s, d in out_defs),
        scratch_shapes=[pltpu.VMEM(s, d) for s, d in scratch_defs],
        compiler_params=pltpu.CompilerParams(vmem_limit_bytes=vmem_limit),
    )(*args)
    return img_s, c_f[0, 0], s_f[0, 0], c_h[0, 0], s_h[0, 0]


# ----------------------------------------------------------------------------
# Plain-JAX reference model (setup-time targets + numerical cross-check)
# ----------------------------------------------------------------------------
def init_params(key):
    """Deterministic stand-in for the pretrained VGG feature extractor."""
    k1, k2 = jax.random.split(key)
    return {
        "w1": jax.random.normal(k1, (8, 3, 3, 3), jnp.float32) * 0.1,
        "b1": jnp.zeros((8,), jnp.float32),
        "w2": jax.random.normal(k2, (16, 8, 3, 3), jnp.float32) * 0.1,
        "b2": jnp.zeros((16,), jnp.float32),
    }


def _ref_conv3x3_relu(x, w, b):
    cout = w.shape[0]
    _, h, wd = x.shape
    xp = jnp.pad(x, ((0, 0), (1, 1), (1, 1)))
    out = jnp.zeros((cout, h, wd), jnp.float32)
    for dy in range(3):
        for dx in range(3):
            out = out + jnp.einsum("oc,chw->ohw", w[:, :, dy, dx],
                                   xp[:, dy:dy + h, dx:dx + wd],
                                   precision=jax.lax.Precision.HIGHEST)
    return jnp.maximum(out + b[:, None, None], 0.0)


def _ref_features(x, params):
    f1 = _ref_conv3x3_relu(x, params["w1"], params["b1"])
    f2 = _ref_conv3x3_relu(f1, params["w2"], params["b2"])
    return f1, f2


def _ref_gram(feat):
    c = feat.shape[0]
    f = feat.reshape(c, -1)
    g = jnp.matmul(f, f.T, precision=jax.lax.Precision.HIGHEST)
    return g / (c * f.shape[1])


def set_targets(content_img, style_img, params):
    """Equivalent of NeuralStyleLoss.set_style / set_content (setup time)."""
    _, c2 = _ref_features(content_img, params)
    s1, s2 = _ref_features(style_img, params)
    return {"content_f2": c2, "gram1": _ref_gram(s1), "gram2": _ref_gram(s2)}


def _ref_losses(img, targets, params):
    f1, f2 = _ref_features(img, params)
    content = jnp.mean(jnp.square(f2 - targets["content_f2"]))
    style = (jnp.mean(jnp.square(_ref_gram(f1) - targets["gram1"]))
             + jnp.mean(jnp.square(_ref_gram(f2) - targets["gram2"])))
    return content, style


# ----------------------------------------------------------------------------
# Forward (= the recipe's per-iteration forward(_) closure, forward only)
# ----------------------------------------------------------------------------
@jax.jit
def neural_style_forward(canvas_logits, targets_full, targets_half, params, ratio):
    _, H, W = canvas_logits.shape
    assert H % 2 == 0 and W % 2 == 0
    Hh, Wh = H // 2, W // 2
    margin = _round_up(W + 3, 128)   # >= (W+2)+1 so every tap window stays in-bounds

    w1_t, b1_c = pack_conv_params(params["w1"], params["b1"])
    w2_t, b2_c = pack_conv_params(params["w2"], params["b2"])

    img_s, c_full, s_full, c_half, s_half = fused_neural_style(
        pack_stored(canvas_logits, margin), stored_mask(H, W, margin),
        interior_flat_mask(Hh, Wh), pool_select_matrix(W),
        w1_t, b1_c, w2_t, b2_c,
        pad_flat_target(targets_full["content_f2"]),
        targets_full["gram1"], targets_full["gram2"],
        pad_flat_target(targets_half["content_f2"]),
        targets_half["gram1"], targets_half["gram2"],
        H=H, W=W, margin=margin)
    img = unpack_stored(img_s, H, W, margin)

    loss_full = (1.0 - ratio) * c_full + ratio * s_full
    loss_half = (1.0 - ratio) * c_half + ratio * s_half
    # The torch forward returns the *second* (half-res) loss dict plus img.
    return {
        "loss": loss_half,
        "content_loss": c_half,
        "style_loss": s_half,
        "img": img,
        "loss_fullres": loss_full,
        "content_loss_fullres": c_full,
        "style_loss_fullres": s_full,
    }


if __name__ == "__main__":
    key = jax.random.PRNGKey(0)
    k_content, k_style, k_canvas, k_params = jax.random.split(key, 4)

    H = W = 16
    content_img = jax.random.uniform(k_content, (3, H, W), jnp.float32)   # pil2t output
    style_img = jax.random.uniform(k_style, (3, H, W), jnp.float32)
    canvas_logits = jax.random.normal(k_canvas, (3, H, W), jnp.float32)   # ParameterizedImg params
    params = init_params(k_params)
    style_ratio = jnp.float32(0.5)

    # loss.set_style / set_content at full res, loss2.* at half res (recipe.fit)
    targets_full = set_targets(content_img, style_img, params)
    targets_half = set_targets(bilinear_half(content_img),
                               bilinear_half(style_img), params)

    out = neural_style_forward(canvas_logits, targets_full, targets_half,
                               params, style_ratio)
    jax.block_until_ready(out)

    assert out["img"].shape == (3, H, W)
    assert out["loss"].shape == ()
    for k in ("loss", "content_loss", "style_loss",
              "loss_fullres", "content_loss_fullres", "style_loss_fullres"):
        assert bool(jnp.isfinite(out[k])), k

    # Cross-check against the plain-JAX f32 reference.  The kernel feeds the
    # MXU bf16 operands (f32 accumulation), so tolerances are loose; genuine
    # layout/index bugs shift these losses by orders of magnitude.
    img_ref = jax.nn.sigmoid(canvas_logits)
    c_f, s_f = _ref_losses(img_ref, targets_full, params)
    c_h, s_h = _ref_losses(bilinear_half(img_ref), targets_half, params)
    assert jnp.allclose(out["img"], img_ref, atol=1e-5)
    assert jnp.allclose(out["content_loss_fullres"], c_f, rtol=2.5e-1, atol=1e-8)
    assert jnp.allclose(out["content_loss"], c_h, rtol=2.5e-1, atol=1e-8)
    assert jnp.allclose(out["style_loss_fullres"], s_f, rtol=5e-1, atol=1e-8)
    assert jnp.allclose(out["style_loss"], s_h, rtol=5e-1, atol=1e-8)

    print("KERNEL_OK")
</pallas_src>

<mosaic_0001>
module attributes {stable_mosaic.version = 11 : i64} {
  func.func @_fused_neural_style_kernel(%arg0: memref<3x580xf32, #tpu.memory_space<vmem>>, %arg1: memref<1x580xf32, #tpu.memory_space<vmem>>, %arg2: memref<1x100xf32, #tpu.memory_space<vmem>>, %arg3: memref<16x8xbf16, #tpu.memory_space<vmem>>, %arg4: memref<8x27xbf16, #tpu.memory_space<vmem>>, %arg5: memref<8x1xf32, #tpu.memory_space<vmem>>, %arg6: memref<16x72xbf16, #tpu.memory_space<vmem>>, %arg7: memref<16x1xf32, #tpu.memory_space<vmem>>, %arg8: memref<16x324xf32, #tpu.memory_space<vmem>>, %arg9: memref<8x8xf32, #tpu.memory_space<vmem>>, %arg10: memref<16x16xf32, #tpu.memory_space<vmem>>, %arg11: memref<16x100xf32, #tpu.memory_space<vmem>>, %arg12: memref<8x8xf32, #tpu.memory_space<vmem>>, %arg13: memref<16x16xf32, #tpu.memory_space<vmem>>, %arg14: memref<3x580xf32, #tpu.memory_space<vmem>>, %arg15: memref<1x1xf32, #tpu.memory_space<vmem>>, %arg16: memref<1x1xf32, #tpu.memory_space<vmem>>, %arg17: memref<1x1xf32, #tpu.memory_space<vmem>>, %arg18: memref<1x1xf32, #tpu.memory_space<vmem>>, %arg19: memref<3x356xf32, #tpu.memory_space<vmem>>, %arg20: memref<8x580xf32, #tpu.memory_space<vmem>>, %arg21: memref<8x356xf32, #tpu.memory_space<vmem>>, %arg22: memref<27x324xf32, #tpu.memory_space<vmem>>, %arg23: memref<72x324xf32, #tpu.memory_space<vmem>>, %arg24: memref<27x100xf32, #tpu.memory_space<vmem>>, %arg25: memref<72x100xf32, #tpu.memory_space<vmem>>) attributes {dimension_semantics = [], scalar_prefetch = 0 : i64, scratch_operands = 7 : i64, tpu.core_type = #tpu.core_type<tc>} {
    %c0 = arith.constant 0 : index
    %c0_0 = arith.constant 0 : index
    %0 = vector.load %arg0[%c0, %c0_0] : memref<3x580xf32, #tpu.memory_space<vmem>>, vector<3x580xf32>
    %1 = arith.negf %0 : vector<3x580xf32>
    %2 = math.exp %1 : vector<3x580xf32>
    %cst = arith.constant 1.000000e+00 : f32
    %3 = vector.broadcast %cst : f32 to vector<3x580xf32>
    %4 = arith.addf %3, %2 : vector<3x580xf32>
    %5 = arith.divf %3, %4 : vector<3x580xf32>
    %c0_1 = arith.constant 0 : index
    %c0_2 = arith.constant 0 : index
    %6 = vector.load %arg1[%c0_1, %c0_2] : memref<1x580xf32, #tpu.memory_space<vmem>>, vector<1x580xf32>
    %7 = vector.broadcast %6 : vector<1x580xf32> to vector<3x580xf32>
    %8 = arith.mulf %5, %7 : vector<3x580xf32>
    %c0_3 = arith.constant 0 : index
    %c0_4 = arith.constant 0 : index
    %9 = vector.load %arg14[%c0_3, %c0_4] : memref<3x580xf32, #tpu.memory_space<vmem>>, vector<3x580xf32>
    tpu.vector_store %arg14[%c0_3, %c0_4], %8 {strides = array<i32>} : memref<3x580xf32, #tpu.memory_space<vmem>>, vector<3x580xf32>,
    %c0_5 = arith.constant 0 : index
    %c128 = arith.constant 128 : index
    %10 = vector.load %arg1[%c0_5, %c128] : memref<1x580xf32, #tpu.memory_space<vmem>>, vector<1x324xf32>
    %c0_6 = arith.constant 0 : index
    %c0_7 = arith.constant 0 : index
    %11 = vector.load %arg2[%c0_6, %c0_7] : memref<1x100xf32, #tpu.memory_space<vmem>>, vector<1x100xf32>
    %c0_8 = arith.constant 0 : index
    %c109 = arith.constant 109 : index
    %12 = vector.load %arg14[%c0_8, %c109] : memref<3x580xf32, #tpu.memory_space<vmem>>, vector<3x324xf32>
    %c0_9 = arith.constant 0 : index
    %c0_10 = arith.constant 0 : index
    %13 = vector.load %arg22[%c0_9, %c0_10] : memref<27x324xf32, #tpu.memory_space<vmem>>, vector<3x324xf32>
    tpu.vector_store %arg22[%c0_9, %c0_10], %12 {strides = array<i32>} : memref<27x324xf32, #tpu.memory_space<vmem>>, vector<3x324xf32>,
    %c0_11 = arith.constant 0 : index
    %c110 = arith.constant 110 : index
    %14 = vector.load %arg14[%c0_11, %c110] : memref<3x580xf32, #tpu.memory_space<vmem>>, vector<3x324xf32>
    %c3 = arith.constant 3 : index
    %c0_12 = arith.constant 0 : index
    %15 = vector.load %arg22[%c3, %c0_12] : memref<27x324xf32, #tpu.memory_space<vmem>>, vector<3x324xf32>
    tpu.vector_store %arg22[%c3, %c0_12], %14 {strides = array<i32>} : memref<27x324xf32, #tpu.memory_space<vmem>>, vector<3x324xf32>,
    %c0_13 = arith.constant 0 : index
    %c111 = arith.constant 111 : index
    %16 = vector.load %arg14[%c0_13, %c111] : memref<3x580xf32, #tpu.memory_space<vmem>>, vector<3x324xf32>
    %c6 = arith.constant 6 : index
    %c0_14 = arith.constant 0 : index
    %17 = vector.load %arg22[%c6, %c0_14] : memref<27x324xf32, #tpu.memory_space<vmem>>, vector<3x324xf32>
    tpu.vector_store %arg22[%c6, %c0_14], %16 {strides = array<i32>} : memref<27x324xf32, #tpu.memory_space<vmem>>, vector<3x324xf32>,
    %c0_15 = arith.constant 0 : index
    %c127 = arith.constant 127 : index
    %18 = vector.load %arg14[%c0_15, %c127] : memref<3x580xf32, #tpu.memory_space<vmem>>, vector<3x324xf32>
    %c9 = arith.constant 9 : index
    %c0_16 = arith.constant 0 : index
    %19 = vector.load %arg22[%c9, %c0_16] : memref<27x324xf32, #tpu.memory_space<vmem>>, vector<3x324xf32>
    tpu.vector_store %arg22[%c9, %c0_16], %18 {strides = array<i32>} : memref<27x324xf32, #tpu.memory_space<vmem>>, vector<3x324xf32>,
    %c0_17 = arith.constant 0 : index
    %c128_18 = arith.constant 128 : index
    %20 = vector.load %arg14[%c0_17, %c128_18] : memref<3x580xf32, #tpu.memory_space<vmem>>, vector<3x324xf32>
    %c12 = arith.constant 12 : index
    %c0_19 = arith.constant 0 : index
    %21 = vector.load %arg22[%c12, %c0_19] : memref<27x324xf32, #tpu.memory_space<vmem>>, vector<3x324xf32>
    tpu.vector_store %arg22[%c12, %c0_19], %20 {strides = array<i32>} : memref<27x324xf32, #tpu.memory_space<vmem>>, vector<3x324xf32>,
    %c0_20 = arith.constant 0 : index
    %c129 = arith.constant 129 : index
    %22 = vector.load %arg14[%c0_20, %c129] : memref<3x580xf32, #tpu.memory_space<vmem>>, vector<3x324xf32>
    %c15 = arith.constant 15 : index
    %c0_21 = arith.constant 0 : index
    %23 = vector.load %arg22[%c15, %c0_21] : memref<27x324xf32, #tpu.memory_space<vmem>>, vector<3x324xf32>
    tpu.vector_store %arg22[%c15, %c0_21], %22 {strides = array<i32>} : memref<27x324xf32, #tpu.memory_space<vmem>>, vector<3x324xf32>,
    %c0_22 = arith.constant 0 : index
    %c145 = arith.constant 145 : index
    %24 = vector.load %arg14[%c0_22, %c145] : memref<3x580xf32, #tpu.memory_space<vmem>>, vector<3x324xf32>
    %c18 = arith.constant 18 : index
    %c0_23 = arith.constant 0 : index
    %25 = vector.load %arg22[%c18, %c0_23] : memref<27x324xf32, #tpu.memory_space<vmem>>, vector<3x324xf32>
    tpu.vector_store %arg22[%c18, %c0_23], %24 {strides = array<i32>} : memref<27x324xf32, #tpu.memory_space<vmem>>, vector<3x324xf32>,
    %c0_24 = arith.constant 0 : index
    %c146 = arith.constant 146 : index
    %26 = vector.load %arg14[%c0_24, %c146] : memref<3x580xf32, #tpu.memory_space<vmem>>, vector<3x324xf32>
    %c21 = arith.constant 21 : index
    %c0_25 = arith.constant 0 : index
    %27 = vector.load %arg22[%c21, %c0_25] : memref<27x324xf32, #tpu.memory_space<vmem>>, vector<3x324xf32>
    tpu.vector_store %arg22[%c21, %c0_25], %26 {strides = array<i32>} : memref<27x324xf32, #tpu.memory_space<vmem>>, vector<3x324xf32>,
    %c0_26 = arith.constant 0 : index
    %c147 = arith.constant 147 : index
    %28 = vector.load %arg14[%c0_26, %c147] : memref<3x580xf32, #tpu.memory_space<vmem>>, vector<3x324xf32>
    %c24 = arith.constant 24 : index
    %c0_27 = arith.constant 0 : index
    %29 = vector.load %arg22[%c24, %c0_27] : memref<27x324xf32, #tpu.memory_space<vmem>>, vector<3x324xf32>
    tpu.vector_store %arg22[%c24, %c0_27], %28 {strides = array<i32>} : memref<27x324xf32, #tpu.memory_space<vmem>>, vector<3x324xf32>,
    %c0_28 = arith.constant 0 : index
    %c0_29 = arith.constant 0 : index
    %30 = vector.load %arg4[%c0_28, %c0_29] : memref<8x27xbf16, #tpu.memory_space<vmem>>, vector<8x27xbf16>
    %c0_30 = arith.constant 0 : index
    %c0_31 = arith.constant 0 : index
    %31 = vector.load %arg22[%c0_30, %c0_31] : memref<27x324xf32, #tpu.memory_space<vmem>>, vector<27x324xf32>
    %32 = arith.truncf %31 : vector<27x324xf32> to vector<27x324xbf16>
    %cst_32 = arith.constant dense<0.000000e+00> : vector<8x324xf32>
    %33 = tpu.matmul %30, %32, %cst_32 {dimension_numbers = #tpu.dot_dimension_numbers<[1], [0], [0], [1], [0, 0, 1, 1], [], []>} : vector<8x27xbf16>, vector<27x324xbf16>, vector<8x324xf32> -> vector<8x324xf32>
    %c0_33 = arith.constant 0 : index
    %c0_34 = arith.constant 0 : index
    %34 = vector.load %arg5[%c0_33, %c0_34] : memref<8x1xf32, #tpu.memory_space<vmem>>, vector<8x1xf32>
    %35 = vector.broadcast %34 : vector<8x1xf32> to vector<8x324xf32>
    %36 = arith.addf %33, %35 : vector<8x324xf32>
    %cst_35 = arith.constant 0.000000e+00 : f32
    %37 = vector.broadcast %cst_35 : f32 to vector<8x324xf32>
    %38 = arith.maximumf %36, %37 : vector<8x324xf32>
    %39 = vector.broadcast %10 : vector<1x324xf32> to vector<8x324xf32>
    %40 = arith.mulf %38, %39 : vector<8x324xf32>
    %cst_36 = arith.constant 0.000000e+00 : f32
    %41 = vector.broadcast %cst_36 : f32 to vector<8x128xf32>
    %c0_37 = arith.constant 0 : index
    %c0_38 = arith.constant 0 : index
    %42 = vector.load %arg20[%c0_37, %c0_38] : memref<8x580xf32, #tpu.memory_space<vmem>>, vector<8x128xf32>
    tpu.vector_store %arg20[%c0_37, %c0_38], %41 {strides = array<i32>} : memref<8x580xf32, #tpu.memory_space<vmem>>, vector<8x128xf32>,
    %cst_39 = arith.constant 0.000000e+00 : f32
    %43 = vector.broadcast %cst_39 : f32 to vector<8x128xf32>
    %c0_40 = arith.constant 0 : index
    %c452 = arith.constant 452 : index
    %44 = vector.load %arg20[%c0_40, %c452] : memref<8x580xf32, #tpu.memory_space<vmem>>, vector<8x128xf32>
    tpu.vector_store %arg20[%c0_40, %c452], %43 {strides = array<i32>} : memref<8x580xf32, #tpu.memory_space<vmem>>, vector<8x128xf32>,
    %c0_41 = arith.constant 0 : index
    %c128_42 = arith.constant 128 : index
    %45 = vector.load %arg20[%c0_41, %c128_42] : memref<8x580xf32, #tpu.memory_space<vmem>>, vector<8x324xf32>
    tpu.vector_store %arg20[%c0_41, %c128_42], %40 {strides = array<i32>} : memref<8x580xf32, #tpu.memory_space<vmem>>, vector<8x324xf32>,
    %c0_43 = arith.constant 0 : index
    %c109_44 = arith.constant 109 : index
    %46 = vector.load %arg20[%c0_43, %c109_44] : memref<8x580xf32, #tpu.memory_space<vmem>>, vector<8x324xf32>
    %c0_45 = arith.constant 0 : index
    %c0_46 = arith.constant 0 : index
    %47 = vector.load %arg23[%c0_45, %c0_46] : memref<72x324xf32, #tpu.memory_space<vmem>>, vector<8x324xf32>
    tpu.vector_store %arg23[%c0_45, %c0_46], %46 {strides = array<i32>} : memref<72x324xf32, #tpu.memory_space<vmem>>, vector<8x324xf32>,
    %c0_47 = arith.constant 0 : index
    %c110_48 = arith.constant 110 : index
    %48 = vector.load %arg20[%c0_47, %c110_48] : memref<8x580xf32, #tpu.memory_space<vmem>>, vector<8x324xf32>
    %c8 = arith.constant 8 : index
    %c0_49 = arith.constant 0 : index
    %49 = vector.load %arg23[%c8, %c0_49] : memref<72x324xf32, #tpu.memory_space<vmem>>, vector<8x324xf32>
    tpu.vector_store %arg23[%c8, %c0_49], %48 {strides = array<i32>} : memref<72x324xf32, #tpu.memory_space<vmem>>, vector<8x324xf32>,
    %c0_50 = arith.constant 0 : index
    %c111_51 = arith.constant 111 : index
    %50 = vector.load %arg20[%c0_50, %c111_51] : memref<8x580xf32, #tpu.memory_space<vmem>>, vector<8x324xf32>
    %c16 = arith.constant 16 : index
    %c0_52 = arith.constant 0 : index
    %51 = vector.load %arg23[%c16, %c0_52] : memref<72x324xf32, #tpu.memory_space<vmem>>, vector<8x324xf32>
    tpu.vector_store %arg23[%c16, %c0_52], %50 {strides = array<i32>} : memref<72x324xf32, #tpu.memory_space<vmem>>, vector<8x324xf32>,
    %c0_53 = arith.constant 0 : index
    %c127_54 = arith.constant 127 : index
    %52 = vector.load %arg20[%c0_53, %c127_54] : memref<8x580xf32, #tpu.memory_space<vmem>>, vector<8x324xf32>
    %c24_55 = arith.constant 24 : index
    %c0_56 = arith.constant 0 : index
    %53 = vector.load %arg23[%c24_55, %c0_56] : memref<72x324xf32, #tpu.memory_space<vmem>>, vector<8x324xf32>
    tpu.vector_store %arg23[%c24_55, %c0_56], %52 {strides = array<i32>} : memref<72x324xf32, #tpu.memory_space<vmem>>, vector<8x324xf32>,
    %c0_57 = arith.constant 0 : index
    %c128_58 = arith.constant 128 : index
    %54 = vector.load %arg20[%c0_57, %c128_58] : memref<8x580xf32, #tpu.memory_space<vmem>>, vector<8x324xf32>
    %c32 = arith.constant 32 : index
    %c0_59 = arith.constant 0 : index
    %55 = vector.load %arg23[%c32, %c0_59] : memref<72x324xf32, #tpu.memory_space<vmem>>, vector<8x324xf32>
    tpu.vector_store %arg23[%c32, %c0_59], %54 {strides = array<i32>} : memref<72x324xf32, #tpu.memory_space<vmem>>, vector<8x324xf32>,
    %c0_60 = arith.constant 0 : index
    %c129_61 = arith.constant 129 : index
    %56 = vector.load %arg20[%c0_60, %c129_61] : memref<8x580xf32, #tpu.memory_space<vmem>>, vector<8x324xf32>
    %c40 = arith.constant 40 : index
    %c0_62 = arith.constant 0 : index
    %57 = vector.load %arg23[%c40, %c0_62] : memref<72x324xf32, #tpu.memory_space<vmem>>, vector<8x324xf32>
    tpu.vector_store %arg23[%c40, %c0_62], %56 {strides = array<i32>} : memref<72x324xf32, #tpu.memory_space<vmem>>, vector<8x324xf32>,
    %c0_63 = arith.constant 0 : index
    %c145_64 = arith.constant 145 : index
    %58 = vector.load %arg20[%c0_63, %c145_64] : memref<8x580xf32, #tpu.memory_space<vmem>>, vector<8x324xf32>
    %c48 = arith.constant 48 : index
    %c0_65 = arith.constant 0 : index
    %59 = vector.load %arg23[%c48, %c0_65] : memref<72x324xf32, #tpu.memory_space<vmem>>, vector<8x324xf32>
    tpu.vector_store %arg23[%c48, %c0_65], %58 {strides = array<i32>} : memref<72x324xf32, #tpu.memory_space<vmem>>, vector<8x324xf32>,
    %c0_66 = arith.constant 0 : index
    %c146_67 = arith.constant 146 : index
    %60 = vector.load %arg20[%c0_66, %c146_67] : memref<8x580xf32, #tpu.memory_space<vmem>>, vector<8x324xf32>
    %c56 = arith.constant 56 : index
    %c0_68 = arith.constant 0 : index
    %61 = vector.load %arg23[%c56, %c0_68] : memref<72x324xf32, #tpu.memory_space<vmem>>, vector<8x324xf32>
    tpu.vector_store %arg23[%c56, %c0_68], %60 {strides = array<i32>} : memref<72x324xf32, #tpu.memory_space<vmem>>, vector<8x324xf32>,
    %c0_69 = arith.constant 0 : index
    %c147_70 = arith.constant 147 : index
    %62 = vector.load %arg20[%c0_69, %c147_70] : memref<8x580xf32, #tpu.memory_space<vmem>>, vector<8x324xf32>
    %c64 = arith.constant 64 : index
    %c0_71 = arith.constant 0 : index
    %63 = vector.load %arg23[%c64, %c0_71] : memref<72x324xf32, #tpu.memory_space<vmem>>, vector<8x324xf32>
    tpu.vector_store %arg23[%c64, %c0_71], %62 {strides = array<i32>} : memref<72x324xf32, #tpu.memory_space<vmem>>, vector<8x324xf32>,
    %c0_72 = arith.constant 0 : index
    %c0_73 = arith.constant 0 : index
    %64 = vector.load %arg6[%c0_72, %c0_73] : memref<16x72xbf16, #tpu.memory_space<vmem>>, vector<16x72xbf16>
    %c0_74 = arith.constant 0 : index
    %c0_75 = arith.constant 0 : index
    %65 = vector.load %arg23[%c0_74, %c0_75] : memref<72x324xf32, #tpu.memory_space<vmem>>, vector<72x324xf32>
    %66 = arith.truncf %65 : vector<72x324xf32> to vector<72x324xbf16>
    %cst_76 = arith.constant dense<0.000000e+00> : vector<16x324xf32>
    %67 = tpu.matmul %64, %66, %cst_76 {dimension_numbers = #tpu.dot_dimension_numbers<[1], [0], [0], [1], [0, 0, 1, 1], [], []>} : vector<16x72xbf16>, vector<72x324xbf16>, vector<16x324xf32> -> vector<16x324xf32>
    %c0_77 = arith.constant 0 : index
    %c0_78 = arith.constant 0 : index
    %68 = vector.load %arg7[%c0_77, %c0_78] : memref<16x1xf32, #tpu.memory_space<vmem>>, vector<16x1xf32>
    %69 = vector.broadcast %68 : vector<16x1xf32> to vector<16x324xf32>
    %70 = arith.addf %67, %69 : vector<16x324xf32>
    %cst_79 = arith.constant 0.000000e+00 : f32
    %71 = vector.broadcast %cst_79 : f32 to vector<16x324xf32>
    %72 = arith.maximumf %70, %71 : vector<16x324xf32>
    %73 = vector.broadcast %10 : vector<1x324xf32> to vector<16x324xf32>
    %74 = arith.mulf %72, %73 : vector<16x324xf32>
    %c0_80 = arith.constant 0 : index
    %c0_81 = arith.constant 0 : index
    %75 = vector.load %arg8[%c0_80, %c0_81] : memref<16x324xf32, #tpu.memory_space<vmem>>, vector<16x324xf32>
    %76 = arith.subf %74, %75 : vector<16x324xf32>
    %77 = arith.mulf %76, %76 : vector<16x324xf32>
    %78 = vector.shape_cast %77 : vector<16x324xf32> to vector<1x16x324xf32>
    %cst_82 = arith.constant dense<0.000000e+00> : vector<1xf32>
    %79 = vector.multi_reduction <add>, %78, %cst_82 [1, 2] : vector<1x16x324xf32> to vector<1xf32>
    %80 = vector.shape_cast %79 : vector<1xf32> to vector<1x1x1xf32>
    %81 = vector.extract %80[0, 0, 0] : f32 from vector<1x1x1xf32>
    %cst_83 = arith.constant 4.096000e+03 : f32
    %82 = arith.divf %81, %cst_83 : f32
    %83 = arith.truncf %40 : vector<8x324xf32> to vector<8x324xbf16>
    %cst_84 = arith.constant dense<0.000000e+00> : vector<8x8xf32>
    %84 = tpu.matmul %83, %83, %cst_84 {dimension_numbers = #tpu.dot_dimension_numbers<[1], [1], [0], [0], [0, 0, 1, 0], [], []>} : vector<8x324xbf16>, vector<8x324xbf16>, vector<8x8xf32> -> vector<8x8xf32>
    %cst_85 = arith.constant 2.048000e+03 : f32
    %85 = vector.broadcast %cst_85 : f32 to vector<8x8xf32>
    %86 = arith.divf %84, %85 : vector<8x8xf32>
    %c0_86 = arith.constant 0 : index
    %c0_87 = arith.constant 0 : index
    %87 = vector.load %arg9[%c0_86, %c0_87] : memref<8x8xf32, #tpu.memory_space<vmem>>, vector<8x8xf32>
    %88 = arith.subf %86, %87 : vector<8x8xf32>
    %89 = arith.truncf %74 : vector<16x324xf32> to vector<16x324xbf16>
    %cst_88 = arith.constant dense<0.000000e+00> : vector<16x16xf32>
    %90 = tpu.matmul %89, %89, %cst_88 {dimension_numbers = #tpu.dot_dimension_numbers<[1], [1], [0], [0], [0, 0, 1, 0], [], []>} : vector<16x324xbf16>, vector<16x324xbf16>, vector<16x16xf32> -> vector<16x16xf32>
    %cst_89 = arith.constant 4.096000e+03 : f32
    %91 = vector.broadcast %cst_89 : f32 to vector<16x16xf32>
    %92 = arith.divf %90, %91 : vector<16x16xf32>
    %c0_90 = arith.constant 0 : index
    %c0_91 = arith.constant 0 : index
    %93 = vector.load %arg10[%c0_90, %c0_91] : memref<16x16xf32, #tpu.memory_space<vmem>>, vector<16x16xf32>
    %94 = arith.subf %92, %93 : vector<16x16xf32>
    %95 = arith.mulf %88, %88 : vector<8x8xf32>
    %96 = vector.shape_cast %95 : vector<8x8xf32> to vector<1x8x8xf32>
    %cst_92 = arith.constant dense<0.000000e+00> : vector<1xf32>
    %97 = vector.multi_reduction <add>, %96, %cst_92 [1, 2] : vector<1x8x8xf32> to vector<1xf32>
    %98 = vector.shape_cast %97 : vector<1xf32> to vector<1x1x1xf32>
    %99 = vector.extract %98[0, 0, 0] : f32 from vector<1x1x1xf32>
    %cst_93 = arith.constant 6.400000e+01 : f32
    %100 = arith.divf %99, %cst_93 : f32
    %101 = arith.mulf %94, %94 : vector<16x16xf32>
    %102 = vector.shape_cast %101 : vector<16x16xf32> to vector<1x16x16xf32>
    %cst_94 = arith.constant dense<0.000000e+00> : vector<1xf32>
    %103 = vector.multi_reduction <add>, %102, %cst_94 [1, 2] : vector<1x16x16xf32> to vector<1xf32>
    %104 = vector.shape_cast %103 : vector<1xf32> to vector<1x1x1xf32>
    %105 = vector.extract %104[0, 0, 0] : f32 from vector<1x1x1xf32>
    %cst_95 = arith.constant 2.560000e+02 : f32
    %106 = arith.divf %105, %cst_95 : f32
    %107 = arith.addf %100, %106 : f32
    %cst_96 = arith.constant 0.000000e+00 : f32
    %108 = vector.broadcast %cst_96 : f32 to vector<3x356xf32>
    %c0_97 = arith.constant 0 : index
    %c0_98 = arith.constant 0 : index
    %109 = vector.load %arg19[%c0_97, %c0_98] : memref<3x356xf32, #tpu.memory_space<vmem>>, vector<3x356xf32>
    tpu.vector_store %arg19[%c0_97, %c0_98], %108 {strides = array<i32>} : memref<3x356xf32, #tpu.memory_space<vmem>>, vector<3x356xf32>,
    %c0_99 = arith.constant 0 : index
    %c147_100 = arith.constant 147 : index
    %110 = vector.load %arg14[%c0_99, %c147_100] : memref<3x580xf32, #tpu.memory_space<vmem>>, vector<3x16xf32>
    %c0_101 = arith.constant 0 : index
    %c148 = arith.constant 148 : index
    %111 = vector.load %arg14[%c0_101, %c148] : memref<3x580xf32, #tpu.memory_space<vmem>>, vector<3x16xf32>
    %112 = arith.addf %110, %111 : vector<3x16xf32>
    %c0_102 = arith.constant 0 : index
    %c165 = arith.constant 165 : index
    %113 = vector.load %arg14[%c0_102, %c165] : memref<3x580xf32, #tpu.memory_space<vmem>>, vector<3x16xf32>
    %114 = arith.addf %112, %113 : vector<3x16xf32>
    %c0_103 = arith.constant 0 : index
    %c166 = arith.constant 166 : index
    %115 = vector.load %arg14[%c0_103, %c166] : memref<3x580xf32, #tpu.memory_space<vmem>>, vector<3x16xf32>
    %116 = arith.addf %114, %115 : vector<3x16xf32>
    %cst_104 = arith.constant 2.500000e-01 : f32
    %117 = vector.broadcast %cst_104 : f32 to vector<3x16xf32>
    %118 = arith.mulf %117, %116 : vector<3x16xf32>
    %119 = arith.truncf %118 : vector<3x16xf32> to vector<3x16xbf16>
    %c0_105 = arith.constant 0 : index
    %c0_106 = arith.constant 0 : index
    %120 = vector.load %arg3[%c0_105, %c0_106] : memref<16x8xbf16, #tpu.memory_space<vmem>>, vector<16x8xbf16>
    %cst_107 = arith.constant dense<0.000000e+00> : vector<3x8xf32>
    %121 = tpu.matmul %119, %120, %cst_107 {dimension_numbers = #tpu.dot_dimension_numbers<[1], [0], [0], [1], [0, 0, 1, 1], [], []>} : vector<3x16xbf16>, vector<16x8xbf16>, vector<3x8xf32> -> vector<3x8xf32>
    %c0_108 = arith.constant 0 : index
    %c139 = arith.constant 139 : index
    %122 = vector.load %arg19[%c0_108, %c139] : memref<3x356xf32, #tpu.memory_space<vmem>>, vector<3x8xf32>
    tpu.vector_store %arg19[%c0_108, %c139], %121 {strides = array<i32>} : memref<3x356xf32, #tpu.memory_space<vmem>>, vector<3x8xf32>,
    %c0_109 = arith.constant 0 : index
    %c183 = arith.constant 183 : index
    %123 = vector.load %arg14[%c0_109, %c183] : memref<3x580xf32, #tpu.memory_space<vmem>>, vector<3x16xf32>
    %c0_110 = arith.constant 0 : index
    %c184 = arith.constant 184 : index
    %124 = vector.load %arg14[%c0_110, %c184] : memref<3x580xf32, #tpu.memory_space<vmem>>, vector<3x16xf32>
    %125 = arith.addf %123, %124 : vector<3x16xf32>
    %c0_111 = arith.constant 0 : index
    %c201 = arith.constant 201 : index
    %126 = vector.load %arg14[%c0_111, %c201] : memref<3x580xf32, #tpu.memory_space<vmem>>, vector<3x16xf32>
    %127 = arith.addf %125, %126 : vector<3x16xf32>
    %c0_112 = arith.constant 0 : index
    %c202 = arith.constant 202 : index
    %128 = vector.load %arg14[%c0_112, %c202] : memref<3x580xf32, #tpu.memory_space<vmem>>, vector<3x16xf32>
    %129 = arith.addf %127, %128 : vector<3x16xf32>
    %cst_113 = arith.constant 2.500000e-01 : f32
    %130 = vector.broadcast %cst_113 : f32 to vector<3x16xf32>
    %131 = arith.mulf %130, %129 : vector<3x16xf32>
    %132 = arith.truncf %131 : vector<3x16xf32> to vector<3x16xbf16>
    %c0_114 = arith.constant 0 : index
    %c0_115 = arith.constant 0 : index
    %133 = vector.load %arg3[%c0_114, %c0_115] : memref<16x8xbf16, #tpu.memory_space<vmem>>, vector<16x8xbf16>
    %cst_116 = arith.constant dense<0.000000e+00> : vector<3x8xf32>
    %134 = tpu.matmul %132, %133, %cst_116 {dimension_numbers = #tpu.dot_dimension_numbers<[1], [0], [0], [1], [0, 0, 1, 1], [], []>} : vector<3x16xbf16>, vector<16x8xbf16>, vector<3x8xf32> -> vector<3x8xf32>
    %c0_117 = arith.constant 0 : index
    %c149 = arith.constant 149 : index
    %135 = vector.load %arg19[%c0_117, %c149] : memref<3x356xf32, #tpu.memory_space<vmem>>, vector<3x8xf32>
    tpu.vector_store %arg19[%c0_117, %c149], %134 {strides = array<i32>} : memref<3x356xf32, #tpu.memory_space<vmem>>, vector<3x8xf32>,
    %c0_118 = arith.constant 0 : index
    %c219 = arith.constant 219 : index
    %136 = vector.load %arg14[%c0_118, %c219] : memref<3x580xf32, #tpu.memory_space<vmem>>, vector<3x16xf32>
    %c0_119 = arith.constant 0 : index
    %c220 = arith.constant 220 : index
    %137 = vector.load %arg14[%c0_119, %c220] : memref<3x580xf32, #tpu.memory_space<vmem>>, vector<3x16xf32>
    %138 = arith.addf %136, %137 : vector<3x16xf32>
    %c0_120 = arith.constant 0 : index
    %c237 = arith.constant 237 : index
    %139 = vector.load %arg14[%c0_120, %c237] : memref<3x580xf32, #tpu.memory_space<vmem>>, vector<3x16xf32>
    %140 = arith.addf %138, %139 : vector<3x16xf32>
    %c0_121 = arith.constant 0 : index
    %c238 = arith.constant 238 : index
    %141 = vector.load %arg14[%c0_121, %c238] : memref<3x580xf32, #tpu.memory_space<vmem>>, vector<3x16xf32>
    %142 = arith.addf %140, %141 : vector<3x16xf32>
    %cst_122 = arith.constant 2.500000e-01 : f32
    %143 = vector.broadcast %cst_122 : f32 to vector<3x16xf32>
    %144 = arith.mulf %143, %142 : vector<3x16xf32>
    %145 = arith.truncf %144 : vector<3x16xf32> to vector<3x16xbf16>
    %c0_123 = arith.constant 0 : index
    %c0_124 = arith.constant 0 : index
    %146 = vector.load %arg3[%c0_123, %c0_124] : memref<16x8xbf16, #tpu.memory_space<vmem>>, vector<16x8xbf16>
    %cst_125 = arith.constant dense<0.000000e+00> : vector<3x8xf32>
    %147 = tpu.matmul %145, %146, %cst_125 {dimension_numbers = #tpu.dot_dimension_numbers<[1], [0], [0], [1], [0, 0, 1, 1], [], []>} : vector<3x16xbf16>, vector<16x8xbf16>, vector<3x8xf32> -> vector<3x8xf32>
    %c0_126 = arith.constant 0 : index
    %c159 = arith.constant 159 : index
    %148 = vector.load %arg19[%c0_126, %c159] : memref<3x356xf32, #tpu.memory_space<vmem>>, vector<3x8xf32>
    tpu.vector_store %arg19[%c0_126, %c159], %147 {strides = array<i32>} : memref<3x356xf32, #tpu.memory_space<vmem>>, vector<3x8xf32>,
    %c0_127 = arith.constant 0 : index
    %c255 = arith.constant 255 : index
    %149 = vector.load %arg14[%c0_127, %c255] : memref<3x580xf32, #tpu.memory_space<vmem>>, vector<3x16xf32>
    %c0_128 = arith.constant 0 : index
    %c256 = arith.constant 256 : index
    %150 = vector.load %arg14[%c0_128, %c256] : memref<3x580xf32, #tpu.memory_space<vmem>>, vector<3x16xf32>
    %151 = arith.addf %149, %150 : vector<3x16xf32>
    %c0_129 = arith.constant 0 : index
    %c273 = arith.constant 273 : index
    %152 = vector.load %arg14[%c0_129, %c273] : memref<3x580xf32, #tpu.memory_space<vmem>>, vector<3x16xf32>
    %153 = arith.addf %151, %152 : vector<3x16xf32>
    %c0_130 = arith.constant 0 : index
    %c274 = arith.constant 274 : index
    %154 = vector.load %arg14[%c0_130, %c274] : memref<3x580xf32, #tpu.memory_space<vmem>>, vector<3x16xf32>
    %155 = arith.addf %153, %154 : vector<3x16xf32>
    %cst_131 = arith.constant 2.500000e-01 : f32
    %156 = vector.broadcast %cst_131 : f32 to vector<3x16xf32>
    %157 = arith.mulf %156, %155 : vector<3x16xf32>
    %158 = arith.truncf %157 : vector<3x16xf32> to vector<3x16xbf16>
    %c0_132 = arith.constant 0 : index
    %c0_133 = arith.constant 0 : index
    %159 = vector.load %arg3[%c0_132, %c0_133] : memref<16x8xbf16, #tpu.memory_space<vmem>>, vector<16x8xbf16>
    %cst_134 = arith.constant dense<0.000000e+00> : vector<3x8xf32>
    %160 = tpu.matmul %158, %159, %cst_134 {dimension_numbers = #tpu.dot_dimension_numbers<[1], [0], [0], [1], [0, 0, 1, 1], [], []>} : vector<3x16xbf16>, vector<16x8xbf16>, vector<3x8xf32> -> vector<3x8xf32>
    %c0_135 = arith.constant 0 : index
    %c169 = arith.constant 169 : index
    %161 = vector.load %arg19[%c0_135, %c169] : memref<3x356xf32, #tpu.memory_space<vmem>>, vector<3x8xf32>
    tpu.vector_store %arg19[%c0_135, %c169], %160 {strides = array<i32>} : memref<3x356xf32, #tpu.memory_space<vmem>>, vector<3x8xf32>,
    %c0_136 = arith.constant 0 : index
    %c291 = arith.constant 291 : index
    %162 = vector.load %arg14[%c0_136, %c291] : memref<3x580xf32, #tpu.memory_space<vmem>>, vector<3x16xf32>
    %c0_137 = arith.constant 0 : index
    %c292 = arith.constant 292 : index
    %163 = vector.load %arg14[%c0_137, %c292] : memref<3x580xf32, #tpu.memory_space<vmem>>, vector<3x16xf32>
    %164 = arith.addf %162, %163 : vector<3x16xf32>
    %c0_138 = arith.constant 0 : index
    %c309 = arith.constant 309 : index
    %165 = vector.load %arg14[%c0_138, %c309] : memref<3x580xf32, #tpu.memory_space<vmem>>, vector<3x16xf32>
    %166 = arith.addf %164, %165 : vector<3x16xf32>
    %c0_139 = arith.constant 0 : index
    %c310 = arith.constant 310 : index
    %167 = vector.load %arg14[%c0_139, %c310] : memref<3x580xf32, #tpu.memory_space<vmem>>, vector<3x16xf32>
    %168 = arith.addf %166, %167 : vector<3x16xf32>
    %cst_140 = arith.constant 2.500000e-01 : f32
    %169 = vector.broadcast %cst_140 : f32 to vector<3x16xf32>
    %170 = arith.mulf %169, %168 : vector<3x16xf32>
    %171 = arith.truncf %170 : vector<3x16xf32> to vector<3x16xbf16>
    %c0_141 = arith.constant 0 : index
    %c0_142 = arith.constant 0 : index
    %172 = vector.load %arg3[%c0_141, %c0_142] : memref<16x8xbf16, #tpu.memory_space<vmem>>, vector<16x8xbf16>
    %cst_143 = arith.constant dense<0.000000e+00> : vector<3x8xf32>
    %173 = tpu.matmul %171, %172, %cst_143 {dimension_numbers = #tpu.dot_dimension_numbers<[1], [0], [0], [1], [0, 0, 1, 1], [], []>} : vector<3x16xbf16>, vector<16x8xbf16>, vector<3x8xf32> -> vector<3x8xf32>
    %c0_144 = arith.constant 0 : index
    %c179 = arith.constant 179 : index
    %174 = vector.load %arg19[%c0_144, %c179] : memref<3x356xf32, #tpu.memory_space<vmem>>, vector<3x8xf32>
    tpu.vector_store %arg19[%c0_144, %c179], %173 {strides = array<i32>} : memref<3x356xf32, #tpu.memory_space<vmem>>, vector<3x8xf32>,
    %c0_145 = arith.constant 0 : index
    %c327 = arith.constant 327 : index
    %175 = vector.load %arg14[%c0_145, %c327] : memref<3x580xf32, #tpu.memory_space<vmem>>, vector<3x16xf32>
    %c0_146 = arith.constant 0 : index
    %c328 = arith.constant 328 : index
    %176 = vector.load %arg14[%c0_146, %c328] : memref<3x580xf32, #tpu.memory_space<vmem>>, vector<3x16xf32>
    %177 = arith.addf %175, %176 : vector<3x16xf32>
    %c0_147 = arith.constant 0 : index
    %c345 = arith.constant 345 : index
    %178 = vector.load %arg14[%c0_147, %c345] : memref<3x580xf32, #tpu.memory_space<vmem>>, vector<3x16xf32>
    %179 = arith.addf %177, %178 : vector<3x16xf32>
    %c0_148 = arith.constant 0 : index
    %c346 = arith.constant 346 : index
    %180 = vector.load %arg14[%c0_148, %c346] : memref<3x580xf32, #tpu.memory_space<vmem>>, vector<3x16xf32>
    %181 = arith.addf %179, %180 : vector<3x16xf32>
    %cst_149 = arith.constant 2.500000e-01 : f32
    %182 = vector.broadcast %cst_149 : f32 to vector<3x16xf32>
    %183 = arith.mulf %182, %181 : vector<3x16xf32>
    %184 = arith.truncf %183 : vector<3x16xf32> to vector<3x16xbf16>
    %c0_150 = arith.constant 0 : index
    %c0_151 = arith.constant 0 : index
    %185 = vector.load %arg3[%c0_150, %c0_151] : memref<16x8xbf16, #tpu.memory_space<vmem>>, vector<16x8xbf16>
    %cst_152 = arith.constant dense<0.000000e+00> : vector<3x8xf32>
    %186 = tpu.matmul %184, %185, %cst_152 {dimension_numbers = #tpu.dot_dimension_numbers<[1], [0], [0], [1], [0, 0, 1, 1], [], []>} : vector<3x16xbf16>, vector<16x8xbf16>, vector<3x8xf32> -> vector<3x8xf32>
    %c0_153 = arith.constant 0 : index
    %c189 = arith.constant 189 : index
    %187 = vector.load %arg19[%c0_153, %c189] : memref<3x356xf32, #tpu.memory_space<vmem>>, vector<3x8xf32>
    tpu.vector_store %arg19[%c0_153, %c189], %186 {strides = array<i32>} : memref<3x356xf32, #tpu.memory_space<vmem>>, vector<3x8xf32>,
    %c0_154 = arith.constant 0 : index
    %c363 = arith.constant 363 : index
    %188 = vector.load %arg14[%c0_154, %c363] : memref<3x580xf32, #tpu.memory_space<vmem>>, vector<3x16xf32>
    %c0_155 = arith.constant 0 : index
    %c364 = arith.constant 364 : index
    %189 = vector.load %arg14[%c0_155, %c364] : memref<3x580xf32, #tpu.memory_space<vmem>>, vector<3x16xf32>
    %190 = arith.addf %188, %189 : vector<3x16xf32>
    %c0_156 = arith.constant 0 : index
    %c381 = arith.constant 381 : index
    %191 = vector.load %arg14[%c0_156, %c381] : memref<3x580xf32, #tpu.memory_space<vmem>>, vector<3x16xf32>
    %192 = arith.addf %190, %191 : vector<3x16xf32>
    %c0_157 = arith.constant 0 : index
    %c382 = arith.constant 382 : index
    %193 = vector.load %arg14[%c0_157, %c382] : memref<3x580xf32, #tpu.memory_space<vmem>>, vector<3x16xf32>
    %194 = arith.addf %192, %193 : vector<3x16xf32>
    %cst_158 = arith.constant 2.500000e-01 : f32
    %195 = vector.broadcast %cst_158 : f32 to vector<3x16xf32>
    %196 = arith.mulf %195, %194 : vector<3x16xf32>
    %197 = arith.truncf %196 : vector<3x16xf32> to vector<3x16xbf16>
    %c0_159 = arith.constant 0 : index
    %c0_160 = arith.constant 0 : index
    %198 = vector.load %arg3[%c0_159, %c0_160] : memref<16x8xbf16, #tpu.memory_space<vmem>>, vector<16x8xbf16>
    %cst_161 = arith.constant dense<0.000000e+00> : vector<3x8xf32>
    %199 = tpu.matmul %197, %198, %cst_161 {dimension_numbers = #tpu.dot_dimension_numbers<[1], [0], [0], [1], [0, 0, 1, 1], [], []>} : vector<3x16xbf16>, vector<16x8xbf16>, vector<3x8xf32> -> vector<3x8xf32>
    %c0_162 = arith.constant 0 : index
    %c199 = arith.constant 199 : index
    %200 = vector.load %arg19[%c0_162, %c199] : memref<3x356xf32, #tpu.memory_space<vmem>>, vector<3x8xf32>
    tpu.vector_store %arg19[%c0_162, %c199], %199 {strides = array<i32>} : memref<3x356xf32, #tpu.memory_space<vmem>>, vector<3x8xf32>,
    %c0_163 = arith.constant 0 : index
    %c399 = arith.constant 399 : index
    %201 = vector.load %arg14[%c0_163, %c399] : memref<3x580xf32, #tpu.memory_space<vmem>>, vector<3x16xf32>
    %c0_164 = arith.constant 0 : index
    %c400 = arith.constant 400 : index
    %202 = vector.load %arg14[%c0_164, %c400] : memref<3x580xf32, #tpu.memory_space<vmem>>, vector<3x16xf32>
    %203 = arith.addf %201, %202 : vector<3x16xf32>
    %c0_165 = arith.constant 0 : index
    %c417 = arith.constant 417 : index
    %204 = vector.load %arg14[%c0_165, %c417] : memref<3x580xf32, #tpu.memory_space<vmem>>, vector<3x16xf32>
    %205 = arith.addf %203, %204 : vector<3x16xf32>
    %c0_166 = arith.constant 0 : index
    %c418 = arith.constant 418 : index
    %206 = vector.load %arg14[%c0_166, %c418] : memref<3x580xf32, #tpu.memory_space<vmem>>, vector<3x16xf32>
    %207 = arith.addf %205, %206 : vector<3x16xf32>
    %cst_167 = arith.constant 2.500000e-01 : f32
    %208 = vector.broadcast %cst_167 : f32 to vector<3x16xf32>
    %209 = arith.mulf %208, %207 : vector<3x16xf32>
    %210 = arith.truncf %209 : vector<3x16xf32> to vector<3x16xbf16>
    %c0_168 = arith.constant 0 : index
    %c0_169 = arith.constant 0 : index
    %211 = vector.load %arg3[%c0_168, %c0_169] : memref<16x8xbf16, #tpu.memory_space<vmem>>, vector<16x8xbf16>
    %cst_170 = arith.constant dense<0.000000e+00> : vector<3x8xf32>
    %212 = tpu.matmul %210, %211, %cst_170 {dimension_numbers = #tpu.dot_dimension_numbers<[1], [0], [0], [1], [0, 0, 1, 1], [], []>} : vector<3x16xbf16>, vector<16x8xbf16>, vector<3x8xf32> -> vector<3x8xf32>
    %c0_171 = arith.constant 0 : index
    %c209 = arith.constant 209 : index
    %213 = vector.load %arg19[%c0_171, %c209] : memref<3x356xf32, #tpu.memory_space<vmem>>, vector<3x8xf32>
    tpu.vector_store %arg19[%c0_171, %c209], %212 {strides = array<i32>} : memref<3x356xf32, #tpu.memory_space<vmem>>, vector<3x8xf32>,
    %c0_172 = arith.constant 0 : index
    %c117 = arith.constant 117 : index
    %214 = vector.load %arg19[%c0_172, %c117] : memref<3x356xf32, #tpu.memory_space<vmem>>, vector<3x100xf32>
    %c0_173 = arith.constant 0 : index
    %c0_174 = arith.constant 0 : index
    %215 = vector.load %arg24[%c0_173, %c0_174] : memref<27x100xf32, #tpu.memory_space<vmem>>, vector<3x100xf32>
    tpu.vector_store %arg24[%c0_173, %c0_174], %214 {strides = array<i32>} : memref<27x100xf32, #tpu.memory_space<vmem>>, vector<3x100xf32>,
    %c0_175 = arith.constant 0 : index
    %c118 = arith.constant 118 : index
    %216 = vector.load %arg19[%c0_175, %c118] : memref<3x356xf32, #tpu.memory_space<vmem>>, vector<3x100xf32>
    %c3_176 = arith.constant 3 : index
    %c0_177 = arith.constant 0 : index
    %217 = vector.load %arg24[%c3_176, %c0_177] : memref<27x100xf32, #tpu.memory_space<vmem>>, vector<3x100xf32>
    tpu.vector_store %arg24[%c3_176, %c0_177], %216 {strides = array<i32>} : memref<27x100xf32, #tpu.memory_space<vmem>>, vector<3x100xf32>,
    %c0_178 = arith.constant 0 : index
    %c119 = arith.constant 119 : index
    %218 = vector.load %arg19[%c0_178, %c119] : memref<3x356xf32, #tpu.memory_space<vmem>>, vector<3x100xf32>
    %c6_179 = arith.constant 6 : index
    %c0_180 = arith.constant 0 : index
    %219 = vector.load %arg24[%c6_179, %c0_180] : memref<27x100xf32, #tpu.memory_space<vmem>>, vector<3x100xf32>
    tpu.vector_store %arg24[%c6_179, %c0_180], %218 {strides = array<i32>} : memref<27x100xf32, #tpu.memory_space<vmem>>, vector<3x100xf32>,
    %c0_181 = arith.constant 0 : index
    %c127_182 = arith.constant 127 : index
    %220 = vector.load %arg19[%c0_181, %c127_182] : memref<3x356xf32, #tpu.memory_space<vmem>>, vector<3x100xf32>
    %c9_183 = arith.constant 9 : index
    %c0_184 = arith.constant 0 : index
    %221 = vector.load %arg24[%c9_183, %c0_184] : memref<27x100xf32, #tpu.memory_space<vmem>>, vector<3x100xf32>
    tpu.vector_store %arg24[%c9_183, %c0_184], %220 {strides = array<i32>} : memref<27x100xf32, #tpu.memory_space<vmem>>, vector<3x100xf32>,
    %c0_185 = arith.constant 0 : index
    %c128_186 = arith.constant 128 : index
    %222 = vector.load %arg19[%c0_185, %c128_186] : memref<3x356xf32, #tpu.memory_space<vmem>>, vector<3x100xf32>
    %c12_187 = arith.constant 12 : index
    %c0_188 = arith.constant 0 : index
    %223 = vector.load %arg24[%c12_187, %c0_188] : memref<27x100xf32, #tpu.memory_space<vmem>>, vector<3x100xf32>
    tpu.vector_store %arg24[%c12_187, %c0_188], %222 {strides = array<i32>} : memref<27x100xf32, #tpu.memory_space<vmem>>, vector<3x100xf32>,
    %c0_189 = arith.constant 0 : index
    %c129_190 = arith.constant 129 : index
    %224 = vector.load %arg19[%c0_189, %c129_190] : memref<3x356xf32, #tpu.memory_space<vmem>>, vector<3x100xf32>
    %c15_191 = arith.constant 15 : index
    %c0_192 = arith.constant 0 : index
    %225 = vector.load %arg24[%c15_191, %c0_192] : memref<27x100xf32, #tpu.memory_space<vmem>>, vector<3x100xf32>
    tpu.vector_store %arg24[%c15_191, %c0_192], %224 {strides = array<i32>} : memref<27x100xf32, #tpu.memory_space<vmem>>, vector<3x100xf32>,
    %c0_193 = arith.constant 0 : index
    %c137 = arith.constant 137 : index
    %226 = vector.load %arg19[%c0_193, %c137] : memref<3x356xf32, #tpu.memory_space<vmem>>, vector<3x100xf32>
    %c18_194 = arith.constant 18 : index
    %c0_195 = arith.constant 0 : index
    %227 = vector.load %arg24[%c18_194, %c0_195] : memref<27x100xf32, #tpu.memory_space<vmem>>, vector<3x100xf32>
    tpu.vector_store %arg24[%c18_194, %c0_195], %226 {strides = array<i32>} : memref<27x100xf32, #tpu.memory_space<vmem>>, vector<3x100xf32>,
    %c0_196 = arith.constant 0 : index
    %c138 = arith.constant 138 : index
    %228 = vector.load %arg19[%c0_196, %c138] : memref<3x356xf32, #tpu.memory_space<vmem>>, vector<3x100xf32>
    %c21_197 = arith.constant 21 : index
    %c0_198 = arith.constant 0 : index
    %229 = vector.load %arg24[%c21_197, %c0_198] : memref<27x100xf32, #tpu.memory_space<vmem>>, vector<3x100xf32>
    tpu.vector_store %arg24[%c21_197, %c0_198], %228 {strides = array<i32>} : memref<27x100xf32, #tpu.memory_space<vmem>>, vector<3x100xf32>,
    %c0_199 = arith.constant 0 : index
    %c139_200 = arith.constant 139 : index
    %230 = vector.load %arg19[%c0_199, %c139_200] : memref<3x356xf32, #tpu.memory_space<vmem>>, vector<3x100xf32>
    %c24_201 = arith.constant 24 : index
    %c0_202 = arith.constant 0 : index
    %231 = vector.load %arg24[%c24_201, %c0_202] : memref<27x100xf32, #tpu.memory_space<vmem>>, vector<3x100xf32>
    tpu.vector_store %arg24[%c24_201, %c0_202], %230 {strides = array<i32>} : memref<27x100xf32, #tpu.memory_space<vmem>>, vector<3x100xf32>,
    %c0_203 = arith.constant 0 : index
    %c0_204 = arith.constant 0 : index
    %232 = vector.load %arg4[%c0_203, %c0_204] : memref<8x27xbf16, #tpu.memory_space<vmem>>, vector<8x27xbf16>
    %c0_205 = arith.constant 0 : index
    %c0_206 = arith.constant 0 : index
    %233 = vector.load %arg24[%c0_205, %c0_206] : memref<27x100xf32, #tpu.memory_space<vmem>>, vector<27x100xf32>
    %234 = arith.truncf %233 : vector<27x100xf32> to vector<27x100xbf16>
    %cst_207 = arith.constant dense<0.000000e+00> : vector<8x100xf32>
    %235 = tpu.matmul %232, %234, %cst_207 {dimension_numbers = #tpu.dot_dimension_numbers<[1], [0], [0], [1], [0, 0, 1, 1], [], []>} : vector<8x27xbf16>, vector<27x100xbf16>, vector<8x100xf32> -> vector<8x100xf32>
    %c0_208 = arith.constant 0 : index
    %c0_209 = arith.constant 0 : index
    %236 = vector.load %arg5[%c0_208, %c0_209] : memref<8x1xf32, #tpu.memory_space<vmem>>, vector<8x1xf32>
    %237 = vector.broadcast %236 : vector<8x1xf32> to vector<8x100xf32>
    %238 = arith.addf %235, %237 : vector<8x100xf32>
    %cst_210 = arith.constant 0.000000e+00 : f32
    %239 = vector.broadcast %cst_210 : f32 to vector<8x100xf32>
    %240 = arith.maximumf %238, %239 : vector<8x100xf32>
    %241 = vector.broadcast %11 : vector<1x100xf32> to vector<8x100xf32>
    %242 = arith.mulf %240, %241 : vector<8x100xf32>
    %cst_211 = arith.constant 0.000000e+00 : f32
    %243 = vector.broadcast %cst_211 : f32 to vector<8x128xf32>
    %c0_212 = arith.constant 0 : index
    %c0_213 = arith.constant 0 : index
    %244 = vector.load %arg21[%c0_212, %c0_213] : memref<8x356xf32, #tpu.memory_space<vmem>>, vector<8x128xf32>
    tpu.vector_store %arg21[%c0_212, %c0_213], %243 {strides = array<i32>} : memref<8x356xf32, #tpu.memory_space<vmem>>, vector<8x128xf32>,
    %cst_214 = arith.constant 0.000000e+00 : f32
    %245 = vector.broadcast %cst_214 : f32 to vector<8x128xf32>
    %c0_215 = arith.constant 0 : index
    %c228 = arith.constant 228 : index
    %246 = vector.load %arg21[%c0_215, %c228] : memref<8x356xf32, #tpu.memory_space<vmem>>, vector<8x128xf32>
    tpu.vector_store %arg21[%c0_215, %c228], %245 {strides = array<i32>} : memref<8x356xf32, #tpu.memory_space<vmem>>, vector<8x128xf32>,
    %c0_216 = arith.constant 0 : index
    %c128_217 = arith.constant 128 : index
    %247 = vector.load %arg21[%c0_216, %c128_217] : memref<8x356xf32, #tpu.memory_space<vmem>>, vector<8x100xf32>
    tpu.vector_store %arg21[%c0_216, %c128_217], %242 {strides = array<i32>} : memref<8x356xf32, #tpu.memory_space<vmem>>, vector<8x100xf32>,
    %c0_218 = arith.constant 0 : index
    %c117_219 = arith.constant 117 : index
    %248 = vector.load %arg21[%c0_218, %c117_219] : memref<8x356xf32, #tpu.memory_space<vmem>>, vector<8x100xf32>
    %c0_220 = arith.constant 0 : index
    %c0_221 = arith.constant 0 : index
    %249 = vector.load %arg25[%c0_220, %c0_221] : memref<72x100xf32, #tpu.memory_space<vmem>>, vector<8x100xf32>
    tpu.vector_store %arg25[%c0_220, %c0_221], %248 {strides = array<i32>} : memref<72x100xf32, #tpu.memory_space<vmem>>, vector<8x100xf32>,
    %c0_222 = arith.constant 0 : index
    %c118_223 = arith.constant 118 : index
    %250 = vector.load %arg21[%c0_222, %c118_223] : memref<8x356xf32, #tpu.memory_space<vmem>>, vector<8x100xf32>
    %c8_224 = arith.constant 8 : index
    %c0_225 = arith.constant 0 : index
    %251 = vector.load %arg25[%c8_224, %c0_225] : memref<72x100xf32, #tpu.memory_space<vmem>>, vector<8x100xf32>
    tpu.vector_store %arg25[%c8_224, %c0_225], %250 {strides = array<i32>} : memref<72x100xf32, #tpu.memory_space<vmem>>, vector<8x100xf32>,
    %c0_226 = arith.constant 0 : index
    %c119_227 = arith.constant 119 : index
    %252 = vector.load %arg21[%c0_226, %c119_227] : memref<8x356xf32, #tpu.memory_space<vmem>>, vector<8x100xf32>
    %c16_228 = arith.constant 16 : index
    %c0_229 = arith.constant 0 : index
    %253 = vector.load %arg25[%c16_228, %c0_229] : memref<72x100xf32, #tpu.memory_space<vmem>>, vector<8x100xf32>
    tpu.vector_store %arg25[%c16_228, %c0_229], %252 {strides = array<i32>} : memref<72x100xf32, #tpu.memory_space<vmem>>, vector<8x100xf32>,
    %c0_230 = arith.constant 0 : index
    %c127_231 = arith.constant 127 : index
    %254 = vector.load %arg21[%c0_230, %c127_231] : memref<8x356xf32, #tpu.memory_space<vmem>>, vector<8x100xf32>
    %c24_232 = arith.constant 24 : index
    %c0_233 = arith.constant 0 : index
    %255 = vector.load %arg25[%c24_232, %c0_233] : memref<72x100xf32, #tpu.memory_space<vmem>>, vector<8x100xf32>
    tpu.vector_store %arg25[%c24_232, %c0_233], %254 {strides = array<i32>} : memref<72x100xf32, #tpu.memory_space<vmem>>, vector<8x100xf32>,
    %c0_234 = arith.constant 0 : index
    %c128_235 = arith.constant 128 : index
    %256 = vector.load %arg21[%c0_234, %c128_235] : memref<8x356xf32, #tpu.memory_space<vmem>>, vector<8x100xf32>
    %c32_236 = arith.constant 32 : index
    %c0_237 = arith.constant 0 : index
    %257 = vector.load %arg25[%c32_236, %c0_237] : memref<72x100xf32, #tpu.memory_space<vmem>>, vector<8x100xf32>
    tpu.vector_store %arg25[%c32_236, %c0_237], %256 {strides = array<i32>} : memref<72x100xf32, #tpu.memory_space<vmem>>, vector<8x100xf32>,
    %c0_238 = arith.constant 0 : index
    %c129_239 = arith.constant 129 : index
    %258 = vector.load %arg21[%c0_238, %c129_239] : memref<8x356xf32, #tpu.memory_space<vmem>>, vector<8x100xf32>
    %c40_240 = arith.constant 40 : index
    %c0_241 = arith.constant 0 : index
    %259 = vector.load %arg25[%c40_240, %c0_241] : memref<72x100xf32, #tpu.memory_space<vmem>>, vector<8x100xf32>
    tpu.vector_store %arg25[%c40_240, %c0_241], %258 {strides = array<i32>} : memref<72x100xf32, #tpu.memory_space<vmem>>, vector<8x100xf32>,
    %c0_242 = arith.constant 0 : index
    %c137_243 = arith.constant 137 : index
    %260 = vector.load %arg21[%c0_242, %c137_243] : memref<8x356xf32, #tpu.memory_space<vmem>>, vector<8x100xf32>
    %c48_244 = arith.constant 48 : index
    %c0_245 = arith.constant 0 : index
    %261 = vector.load %arg25[%c48_244, %c0_245] : memref<72x100xf32, #tpu.memory_space<vmem>>, vector<8x100xf32>
    tpu.vector_store %arg25[%c48_244, %c0_245], %260 {strides = array<i32>} : memref<72x100xf32, #tpu.memory_space<vmem>>, vector<8x100xf32>,
    %c0_246 = arith.constant 0 : index
    %c138_247 = arith.constant 138 : index
    %262 = vector.load %arg21[%c0_246, %c138_247] : memref<8x356xf32, #tpu.memory_space<vmem>>, vector<8x100xf32>
    %c56_248 = arith.constant 56 : index
    %c0_249 = arith.constant 0 : index
    %263 = vector.load %arg25[%c56_248, %c0_249] : memref<72x100xf32, #tpu.memory_space<vmem>>, vector<8x100xf32>
    tpu.vector_store %arg25[%c56_248, %c0_249], %262 {strides = array<i32>} : memref<72x100xf32, #tpu.memory_space<vmem>>, vector<8x100xf32>,
    %c0_250 = arith.constant 0 : index
    %c139_251 = arith.constant 139 : index
    %264 = vector.load %arg21[%c0_250, %c139_251] : memref<8x356xf32, #tpu.memory_space<vmem>>, vector<8x100xf32>
    %c64_252 = arith.constant 64 : index
    %c0_253 = arith.constant 0 : index
    %265 = vector.load %arg25[%c64_252, %c0_253] : memref<72x100xf32, #tpu.memory_space<vmem>>, vector<8x100xf32>
    tpu.vector_store %arg25[%c64_252, %c0_253], %264 {strides = array<i32>} : memref<72x100xf32, #tpu.memory_space<vmem>>, vector<8x100xf32>,
    %c0_254 = arith.constant 0 : index
    %c0_255 = arith.constant 0 : index
    %266 = vector.load %arg6[%c0_254, %c0_255] : memref<16x72xbf16, #tpu.memory_space<vmem>>, vector<16x72xbf16>
    %c0_256 = arith.constant 0 : index
    %c0_257 = arith.constant 0 : index
    %267 = vector.load %arg25[%c0_256, %c0_257] : memref<72x100xf32, #tpu.memory_space<vmem>>, vector<72x100xf32>
    %268 = arith.truncf %267 : vector<72x100xf32> to vector<72x100xbf16>
    %cst_258 = arith.constant dense<0.000000e+00> : vector<16x100xf32>
    %269 = tpu.matmul %266, %268, %cst_258 {dimension_numbers = #tpu.dot_dimension_numbers<[1], [0], [0], [1], [0, 0, 1, 1], [], []>} : vector<16x72xbf16>, vector<72x100xbf16>, vector<16x100xf32> -> vector<16x100xf32>
    %c0_259 = arith.constant 0 : index
    %c0_260 = arith.constant 0 : index
    %270 = vector.load %arg7[%c0_259, %c0_260] : memref<16x1xf32, #tpu.memory_space<vmem>>, vector<16x1xf32>
    %271 = vector.broadcast %270 : vector<16x1xf32> to vector<16x100xf32>
    %272 = arith.addf %269, %271 : vector<16x100xf32>
    %cst_261 = arith.constant 0.000000e+00 : f32
    %273 = vector.broadcast %cst_261 : f32 to vector<16x100xf32>
    %274 = arith.maximumf %272, %273 : vector<16x100xf32>
    %275 = vector.broadcast %11 : vector<1x100xf32> to vector<16x100xf32>
    %276 = arith.mulf %274, %275 : vector<16x100xf32>
    %c0_262 = arith.constant 0 : index
    %c0_263 = arith.constant 0 : index
    %277 = vector.load %arg11[%c0_262, %c0_263] : memref<16x100xf32, #tpu.memory_space<vmem>>, vector<16x100xf32>
    %278 = arith.subf %276, %277 : vector<16x100xf32>
    %279 = arith.mulf %278, %278 : vector<16x100xf32>
    %280 = vector.shape_cast %279 : vector<16x100xf32> to vector<1x16x100xf32>
    %cst_264 = arith.constant dense<0.000000e+00> : vector<1xf32>
    %281 = vector.multi_reduction <add>, %280, %cst_264 [1, 2] : vector<1x16x100xf32> to vector<1xf32>
    %282 = vector.shape_cast %281 : vector<1xf32> to vector<1x1x1xf32>
    %283 = vector.extract %282[0, 0, 0] : f32 from vector<1x1x1xf32>
    %cst_265 = arith.constant 1.024000e+03 : f32
    %284 = arith.divf %283, %cst_265 : f32
    %285 = arith.truncf %242 : vector<8x100xf32> to vector<8x100xbf16>
    %cst_266 = arith.constant dense<0.000000e+00> : vector<8x8xf32>
    %286 = tpu.matmul %285, %285, %cst_266 {dimension_numbers = #tpu.dot_dimension_numbers<[1], [1], [0], [0], [0, 0, 1, 0], [], []>} : vector<8x100xbf16>, vector<8x100xbf16>, vector<8x8xf32> -> vector<8x8xf32>
    %cst_267 = arith.constant 5.120000e+02 : f32
    %287 = vector.broadcast %cst_267 : f32 to vector<8x8xf32>
    %288 = arith.divf %286, %287 : vector<8x8xf32>
    %c0_268 = arith.constant 0 : index
    %c0_269 = arith.constant 0 : index
    %289 = vector.load %arg12[%c0_268, %c0_269] : memref<8x8xf32, #tpu.memory_space<vmem>>, vector<8x8xf32>
    %290 = arith.subf %288, %289 : vector<8x8xf32>
    %291 = arith.truncf %276 : vector<16x100xf32> to vector<16x100xbf16>
    %cst_270 = arith.constant dense<0.000000e+00> : vector<16x16xf32>
    %292 = tpu.matmul %291, %291, %cst_270 {dimension_numbers = #tpu.dot_dimension_numbers<[1], [1], [0], [0], [0, 0, 1, 0], [], []>} : vector<16x100xbf16>, vector<16x100xbf16>, vector<16x16xf32> -> vector<16x16xf32>
    %cst_271 = arith.constant 1.024000e+03 : f32
    %293 = vector.broadcast %cst_271 : f32 to vector<16x16xf32>
    %294 = arith.divf %292, %293 : vector<16x16xf32>
    %c0_272 = arith.constant 0 : index
    %c0_273 = arith.constant 0 : index
    %295 = vector.load %arg13[%c0_272, %c0_273] : memref<16x16xf32, #tpu.memory_space<vmem>>, vector<16x16xf32>
    %296 = arith.subf %294, %295 : vector<16x16xf32>
    %297 = arith.mulf %290, %290 : vector<8x8xf32>
    %298 = vector.shape_cast %297 : vector<8x8xf32> to vector<1x8x8xf32>
    %cst_274 = arith.constant dense<0.000000e+00> : vector<1xf32>
    %299 = vector.multi_reduction <add>, %298, %cst_274 [1, 2] : vector<1x8x8xf32> to vector<1xf32>
    %300 = vector.shape_cast %299 : vector<1xf32> to vector<1x1x1xf32>
    %301 = vector.extract %300[0, 0, 0] : f32 from vector<1x1x1xf32>
    %cst_275 = arith.constant 6.400000e+01 : f32
    %302 = arith.divf %301, %cst_275 : f32
    %303 = arith.mulf %296, %296 : vector<16x16xf32>
    %304 = vector.shape_cast %303 : vector<16x16xf32> to vector<1x16x16xf32>
    %cst_276 = arith.constant dense<0.000000e+00> : vector<1xf32>
    %305 = vector.multi_reduction <add>, %304, %cst_276 [1, 2] : vector<1x16x16xf32> to vector<1xf32>
    %306 = vector.shape_cast %305 : vector<1xf32> to vector<1x1x1xf32>
    %307 = vector.extract %306[0, 0, 0] : f32 from vector<1x1x1xf32>
    %cst_277 = arith.constant 2.560000e+02 : f32
    %308 = arith.divf %307, %cst_277 : f32
    %309 = arith.addf %302, %308 : f32
    %310 = vector.broadcast %82 : f32 to vector<1x1xf32>
    %c0_278 = arith.constant 0 : index
    %c0_279 = arith.constant 0 : index
    %311 = vector.load %arg15[%c0_278, %c0_279] : memref<1x1xf32, #tpu.memory_space<vmem>>, vector<1x1xf32>
    tpu.vector_store %arg15[%c0_278, %c0_279], %310 {strides = array<i32>} : memref<1x1xf32, #tpu.memory_space<vmem>>, vector<1x1xf32>,
    %312 = vector.broadcast %107 : f32 to vector<1x1xf32>
    %c0_280 = arith.constant 0 : index
    %c0_281 = arith.constant 0 : index
    %313 = vector.load %arg16[%c0_280, %c0_281] : memref<1x1xf32, #tpu.memory_space<vmem>>, vector<1x1xf32>
    tpu.vector_store %arg16[%c0_280, %c0_281], %312 {strides = array<i32>} : memref<1x1xf32, #tpu.memory_space<vmem>>, vector<1x1xf32>,
    %314 = vector.broadcast %284 : f32 to vector<1x1xf32>
    %c0_282 = arith.constant 0 : index
    %c0_283 = arith.constant 0 : index
    %315 = vector.load %arg17[%c0_282, %c0_283] : memref<1x1xf32, #tpu.memory_space<vmem>>, vector<1x1xf32>
    tpu.vector_store %arg17[%c0_282, %c0_283], %314 {strides = array<i32>} : memref<1x1xf32, #tpu.memory_space<vmem>>, vector<1x1xf32>,
    %316 = vector.broadcast %309 : f32 to vector<1x1xf32>
    %c0_284 = arith.constant 0 : index
    %c0_285 = arith.constant 0 : index
    %317 = vector.load %arg18[%c0_284, %c0_285] : memref<1x1xf32, #tpu.memory_space<vmem>>, vector<1x1xf32>
    tpu.vector_store %arg18[%c0_284, %c0_285], %316 {strides = array<i32>} : memref<1x1xf32, #tpu.memory_space<vmem>>, vector<1x1xf32>,
    return
  }
}

</mosaic_0001>

<bundles_post_ra>
// kernel: neural_style_forward.1
= control target key start
LH: loop header
LB: loop body
LE: loop exit
PB: predicated region body
PF: predicated region fallthrough
CT: control target
= control target key end

     0   :  { %s3426_s0 = inlined_call_operand.vmem [shape: f32[3,580], index: 0, kind: input, shape index: {}]   ;;  %s3427_s1 = inlined_call_operand.vmem [shape: f32[1,580], index: 1, kind: input, shape index: {}]   ;;  %s3428_s2 = inlined_call_operand.vmem [shape: f32[1,100], index: 2, kind: input, shape index: {}]   ;;  %s3429_s3 = inlined_call_operand.vmem [shape: bf16[16,8], index: 3, kind: input, shape index: {}]   ;;  %s3430_s4 = inlined_call_operand.vmem [shape: bf16[8,27], index: 4, kind: input, shape index: {}]   ;;  %s3431_s5 = inlined_call_operand.vmem [shape: f32[8,1], index: 5, kind: input, shape index: {}]   ;;  %s3432_s6 = inlined_call_operand.vmem [shape: bf16[16,72], index: 6, kind: input, shape index: {}]   ;;  %s3433_s7 = inlined_call_operand.vmem [shape: f32[16,1], index: 7, kind: input, shape index: {}]   ;;  %s3434_s8 = inlined_call_operand.vmem [shape: f32[16,324], index: 8, kind: input, shape index: {}]   ;;  %s3435_s9 = inlined_call_operand.vmem [shape: f32[8,8], index: 9, kind: input, shape index: {}]   ;;  %s3436_s10 = inlined_call_operand.vmem [shape: f32[16,16], index: 10, kind: input, shape index: {}]   ;;  %s3437_s11 = inlined_call_operand.vmem [shape: f32[16,100], index: 11, kind: input, shape index: {}]   ;;  %s3438_s12 = inlined_call_operand.vmem [shape: f32[8,8], index: 12, kind: input, shape index: {}]   ;;  %s3439_s13 = inlined_call_operand.vmem [shape: f32[16,16], index: 13, kind: input, shape index: {}]   ;;  %s3440_s14 = inlined_call_operand.vmem [shape: f32[3,580], index: 14, kind: output, shape index: {0}]   ;;  %s3441_s15 = inlined_call_operand.hbm [shape: f32[1,1], index: 15, kind: output, shape index: {1}]   ;;  %s3442_s16 = inlined_call_operand.hbm [shape: f32[1,1], index: 16, kind: output, shape index: {2}]   ;;  %s3443_s17 = inlined_call_operand.hbm [shape: f32[1,1], index: 17, kind: output, shape index: {3}]   ;;  %s3444_s18 = inlined_call_operand.hbm [shape: f32[1,1], index: 18, kind: output, shape index: {4}]  }
   0x1   :  { %3447 = sst [smem:[#allocation19_spill]] %s3426_s0 }
   0x2   :  { %3448 = sst [smem:[#allocation20_spill]] %s3427_s1 }
   0x3   :  { %3449 = sst [smem:[#allocation21_spill]] %s3428_s2 }
   0x4   :  { %24 = vsyncpa [#allocation10], 0 }
   0x5   :  { %25 = vsyncpa [#allocation12], 0  ;;  %s3450_s29 = sld [smem:[#allocation19_spill]] }
   0xb   :  { %v57_v0 = vld [vmem:[%s3450_s29 + $0x8] sm:$0x77]  ;;  %v56_v2 = vld [vmem:[%s3450_s29] sm:$0x77]  ;;  %v58_v4 = vld [vmem:[%s3450_s29 + $0x10] sm:$0x7] }
   0xc   :  { %v2253_v1 = vmul.f32 -1.442695, %v57_v0  ;;  %v2252_v3 = vmul.f32 -1.442695, %v56_v2  ;;  %v2254_v5 = vmul.f32 -1.442695, %v58_v4 }
   0xe   :  { %2519 = vpow2.f32 %v2253_v1 }
   0xf   :  { %2521 = vpow2.f32 %v2252_v3 }
  0x10   :  { %2523 = vpow2.f32 %v2254_v5 }
  0x11   :  { %26 = vsyncpa [#allocation15], 0  ;;  %v79_v6 = vlaneseq  ;;  %s3451_s22 = sld [smem:[#allocation20_spill]]  ;;  %vm109_vm0 = vcmask 550912   ;;  %s2619_s19 = smov 109   ;;  %v2623_v47 = vmov 0.0  }
  0x12   :  { %s2620_s21 = smov 19   ;;  %s2621_s24 = smov 127   ;;  %2327 = vmatprep.subr.bf16.mxu1 %v2623_v47  ;;  %481 = vst [vmem:[#allocation3] sm:$0xff] %v2623_v47  ;;  %1102 = vst [vmem:[#allocation2] sm:$0x77] %v2623_v47  ;;  %vm238_vm1 = vcmask 555012  }
  0x13   :  { %v2757_v10 = vshrl.u32 %v79_v6, 7  ;;  %s2622_s23 = smov 111   ;;  %s2624_s27 = smov 110   ;;  %vm2629_vm2 = vmmov 0   ;;  %vm262_vm3 = vcmask 556039   ;;  %vm266_vm4 = vcmask 549888  }
  0x14   :  { %s2625_s2 = smov 18   ;;  %s2626_s25 = smov 17   ;;  %2331 = vmatprep.mubr.msk.bf16.mxu1 %vm2629_vm2, %v2623_v47  ;;  %vm327_vm5 = vcmask 891904   ;;  %vm290_vm6 = vcmask 552962   ;;  %vm314_vm7 = vcmask 556037   ;;  %vm365_vm8 = vcmask 1044480  }
  0x15   :  { %v89_v13 = vsub.s32 2, %v2757_v10  ;;  %v93_v14 = vsub.s32 3, %v2757_v10  ;;  %v81_v17 = vsub.s32 0, %v2757_v10  ;;  %v85_v18 = vsub.s32 1, %v2757_v10  ;;  %s2627_s20 = smov 1   ;;  %s2633_s0 = smov 93  }
  0x16   :  { %v97_v24 = vsub.s32 4, %v2757_v10  ;;  %vm127_vm9 = vcmask 154624   ;;  %vm366_vm10 = vcmask 1045504   ;;  %vm254_vm11 = vcmask 1039360   ;;  %s2635_s1 = smov 21  }
  0x17   :  { %v77_v16 = vld [vmem:[%s3451_s22] sm:$0x1f]  ;;  %vm306_vm12 = vcmask 900096   ;;  %vm155_vm13 = vcmask 146432   ;;  %vm282_vm14 = vcmask 908288   ;;  %vm184_vm15 = vcmask 138240  }
  0x18   :  { %v90_v19 = vrot.slane %v77_v16, %v89_v13  ;;  %v94_v20 = vrot.slane %v77_v16, %v93_v14  ;;  %v82_v21 = vrot.slane %v77_v16, %v81_v17  ;;  %v86_v22 = vrot.slane %v77_v16, %v85_v18 }
  0x19   :  { %v98_v29 = vrot.slane %v77_v16, %v97_v24  ;;  %v2628_v24 = vmov 0  }
  0x1a   :  { %v101_v23 = vcombine.low %v90_v19, %v94_v20  ;;  %v100_v25 = vcombine.low %v82_v21, %v86_v22  ;;  %410 = vmatprep.mubr.bf16.mxu0 %v2628_v24  ;;  %2489 = vset.pattern.permute.xlu0 %v2628_v24 }
  0x1b   :  { %v2520_v7 = vpop.eup %2519  ;;  %2490 = vset.pattern.permute.xlu1 %v2628_v24 }
  0x1c   :  { %v2522_v8 = vpop.eup %2521  ;;  %v69_v9 = vadd.f32 1.0, %v2520_v7 }
  0x1d   :  { %v68_v11 = vadd.f32 1.0, %v2522_v8  ;;  %v2524_v12 = vpop.eup %2523 }
  0x1e   :  { %2525 = vrcp.f32 %v69_v9  ;;  %v70_v15 = vadd.f32 1.0, %v2524_v12 }
  0x1f   :  { %2527 = vrcp.f32 %v68_v11 }
  0x20   :  { %2529 = vrcp.f32 %v70_v15 }
  0x2b   :  { %v2526_v26 = vpop.eup %2525 }
  0x2c   :  { %v2528_v27 = vpop.eup %2527  ;;  %v105_v28 = vmul.f32 %v2526_v26, %v101_v23 }
  0x2d   :  { %v104_v30 = vmul.f32 %v2528_v27, %v100_v25  ;;  %v2530_v31 = vpop.eup %2529  ;;  %v355_v27 = vld [vmem:[%s3431_s5] sm:$0xff] }
  0x2e   :  { %108 = vst [vmem:[%s3440_s14 + $0x8] sm:$0x77] %v105_v28  ;;  %v106_v32 = vmul.f32 %v2530_v31, %v98_v29 }
  0x2f   :  { %107 = vst [vmem:[%s3440_s14] sm:$0x77] %v104_v30 }
  0x30   :  { %110 = vst.msk [vmem:[%s3440_s14 + $0x10] sm:$0x7] %vm109_vm0, %v106_v32 }
  0x35   :  { %v317_v33 = vld [vmem:[%s3440_s14 + $0xc] sm:$0x7] }
  0x36   :  { %v241_v34 = vld [vmem:[%s3440_s14 + $0xc] sm:$0x7]  ;;  %325 = vrot.lane.b32.xlu1 %v317_v33, %s2619_s19  ;;  %v113_v35 = vld [vmem:[%s3440_s14] sm:$0x77] }
  0x37   :  { %119 = vrot.lane.b32.xlu0 %v113_v35, %s2620_s21  ;;  %v316_v36 = vld [vmem:[%s3440_s14 + $0x4] sm:$0x77]  ;;  %v247_v37 = vrot.slane %v241_v34, 1  ;;  %v269_v40 = vld [vmem:[%s3440_s14 + $0xc] sm:$0x7]  ;;  %v117_v51 = vcombine.high %v113_v35, %v113_v35 }
  0x38   :  { %v320_v38 = vcombine.high %v316_v36, %v316_v36  ;;  %v2802_v39 = vld [vmem:[%s3440_s14 + $0x8] sm:$0x77]  ;;  %v275_v42 = vrot.slane %v269_v40, 6  ;;  %v166_v53 = vld [vmem:[%s3440_s14] sm:$0x77] }
  0x39   :  { %v240_v41 = vld [vmem:[%s3440_s14 + $0x4] sm:$0x77]  ;;  %v293_v44 = vld [vmem:[%s3440_s14 + $0xc] sm:$0x7]  ;;  %v172_v55 = vrot.slane %v166_v53, 2  ;;  %v170_v7 = vcombine.high %v166_v53, %v166_v53  ;;  %v118_v22 = vcombine.high %v2802_v39, %v2802_v39 }
  0x3a   :  { %321 = vrot.lane.b32.xlu1 %v316_v36, %s2619_s19  ;;  %v245_v43 = vrot.slane %v240_v41, 1  ;;  %v292_v45 = vld [vmem:[%s3440_s14 + $0x4] sm:$0x77]  ;;  %v299_v46 = vrot.slane %v293_v44, 3  ;;  %v244_v57 = vcombine.high %v240_v41, %v240_v41 }
  0x3b   :  { %252 = vrot.lane.b32.xlu0 %v247_v37, %s2621_s24  ;;  %v297_v48 = vrot.slane %v292_v45, 3  ;;  %v268_v49 = vld [vmem:[%s3440_s14 + $0x4] sm:$0x77]  ;;  %v296_v61 = vcombine.high %v292_v45, %v292_v45  ;;  %v173_v11 = vrot.slane %v170_v7, 2 }
  0x3c   :  { %v273_v50 = vrot.slane %v268_v49, 6  ;;  %v138_v52 = vld [vmem:[%s3440_s14 + $0x8] sm:$0x77]  ;;  %v246_v59 = vrot.slane %v244_v57, 1  ;;  %v137_v62 = vld [vmem:[%s3440_s14] sm:$0x77]  ;;  %v272_v5 = vcombine.high %v268_v49, %v268_v49 }
  0x3d   :  { %v145_v54 = vrot.slane %v138_v52, 5  ;;  %v167_v56 = vld [vmem:[%s3440_s14 + $0x8] sm:$0x77]  ;;  %v298_v0 = vrot.slane %v296_v61, 3  ;;  %v141_v1 = vcombine.high %v137_v62, %v137_v62  ;;  %v143_v4 = vrot.slane %v137_v62, 5 }
  0x3e   :  { %123 = vrot.lane.b32.xlu1 %v2802_v39, %s2620_s21  ;;  %v174_v58 = vrot.slane %v167_v56, 2  ;;  %v200_v60 = vld [vmem:[%s3440_s14 + $0x8] sm:$0x77]  ;;  %v199_v8 = vld [vmem:[%s3440_s14] sm:$0x77]  ;;  %v274_v9 = vrot.slane %v272_v5, 6  ;;  %v142_v16 = vcombine.high %v138_v52, %v138_v52  ;;  %v171_v23 = vcombine.high %v167_v56, %v167_v56 }
  0x3f   :  { %323 = vrot.lane.b32.xlu0 %v320_v38, %s2619_s19  ;;  %v207_v63 = vrot.slane %v200_v60, 7  ;;  %v228_v2 = vld [vmem:[%s3440_s14 + $0x4] sm:$0x77]  ;;  %v144_v6 = vrot.slane %v141_v1, 5  ;;  %v203_v12 = vcombine.high %v199_v8, %v199_v8  ;;  %v205_v15 = vrot.slane %v199_v8, 7 }
  0x40   :  { %237 = vst [vmem:[#allocation5 + $0x20] sm:$0x70] %v228_v2  ;;  %v232_v3 = vcombine.low %v228_v2, %v228_v2  ;;  %v2504_v14 = vld [vmem:[%s3440_s14 + $0xc] ss:$0 sps:$4 sm:$0x77]   ;;  %v146_v20 = vrot.slane %v142_v16, 5  ;;  %v204_v21 = vcombine.high %v200_v60, %v200_v60 }
  0x41   :  { %v206_v19 = vrot.slane %v203_v12, 7  ;;  %239 = vst.msk [vmem:[#allocation5 + $0x28] sm:$0x70] %vm238_vm1, %v2504_v14  ;;  %v175_v26 = vrot.slane %v171_v23, 2  ;;  %vm217_vm1 = vcmask 7168  }
  0x42   :  { %280 = vrot.lane.b32.xlu1 %v275_v42, %s2622_s23  ;;  %236 = vst [vmem:[#allocation5 + $0x18] sm:$0x70] %v232_v3  ;;  %v208_v25 = vrot.slane %v204_v21, 7  ;;  %v2630_v42 = vmov 65535   ;;  %v3002_v10 = vld [vmem:[%s3440_s14 + $0x4] sm:$0x7] }
  0x43   :  { %248 = vrot.lane.b32.xlu0 %v245_v43, %s2621_s24  ;;  %v367_v43 = vsel %vm365_vm8, 4294967295, %v2630_v42  ;;  %vm482_vm8 = vcmask 1048096  }
  0x44   :  { %483 = vst.msk [vmem:[#allocation3 + $0x18] sm:$0xff] %vm482_vm8, %v2623_v47  ;;  %vm1733_vm8 = vcmask 723592  }
  0x46   :  { %304 = vrot.lane.b32.xlu1 %v299_v46, %s2624_s27 }
  0x47   :  { %300 = vrot.lane.b32.xlu0 %v297_v48, %s2624_s27 }
  0x4a   :  { %276 = vrot.lane.b32.xlu1 %v273_v50, %s2622_s23  ;;  %v2897_v50 = vsel %vm366_vm10, %v367_v43, 0  ;;  %vm484_vm10 = vcmask 556032   ;;  %v111_v43 = vld [vmem:[%s3451_s22 + $0x1] sm:$0x7]  ;;  %s2640_s22 = smov 41  }
  0x4b   :  { %121 = vrot.lane.b32.xlu0 %v117_v51, %s2620_s21 }
  0x4e   :  { %151 = vrot.lane.b32.xlu1 %v145_v54, %s2625_s2 }
  0x4f   :  { %176 = vrot.lane.b32.xlu0 %v172_v55, %s2626_s25 }
  0x52   :  { %180 = vrot.lane.b32.xlu1 %v174_v58, %s2626_s25 }
  0x53   :  { %250 = vrot.lane.b32.xlu0 %v246_v59, %s2621_s24 }
  0x56   :  { %213 = vrot.lane.b32.xlu1 %v207_v63, %s2627_s20 }
  0x57   :  { %302 = vrot.lane.b32.xlu0 %v298_v0, %s2624_s27 }
  0x5a   :  { %147 = vrot.lane.b32.xlu1 %v143_v4, %s2625_s2 }
  0x5b   :  { %149 = vrot.lane.b32.xlu0 %v144_v6, %s2625_s2 }
  0x5e   :  { %278 = vrot.lane.b32.xlu1 %v274_v9, %s2622_s23 }
  0x5f   :  { %178 = vrot.lane.b32.xlu0 %v173_v11, %s2626_s25 }
  0x62   :  { %209 = vrot.lane.b32.xlu1 %v205_v15, %s2627_s20 }
  0x63   :  { %211 = vrot.lane.b32.xlu0 %v206_v19, %s2627_s20 }
  0x66   :  { %153 = vrot.lane.b32.xlu1 %v146_v20, %s2625_s2 }
  0x67   :  { %125 = vrot.lane.b32.xlu0 %v118_v22, %s2620_s21 }
  0x6a   :  { %215 = vrot.lane.b32.xlu1 %v208_v25, %s2627_s20 }
  0x6b   :  { %182 = vrot.lane.b32.xlu0 %v175_v26, %s2626_s25 }
  0x6e   :  { %572 = vrot.lane.b32.xlu1 %v2623_v47, %s2627_s20 }
  0x6f   :  { %358 = vperm.xlu0 %2489, %v355_v27  }
  0x72   :  { %522 = vrot.lane.b32.xlu1 %v2623_v47, %s2625_s2 }
  0x73   :  { %547 = vrot.lane.b32.xlu0 %v2623_v47, %s2626_s25 }
  0x77   :  { %497 = vrot.lane.b32.xlu0 %v2623_v47, %s2620_s21 }
  0xa8   :  { %v326_v28 = vpop.permute.xlu1 %325 }
  0xa9   :  { %335 = vst.msk [vmem:[#allocation5 + $0x58] sm:$0x7] %vm109_vm0, %v326_v28  ;;  %v120_v29 = vpop.permute.xlu0 %119 }
  0xac   :  { %v322_v30 = vpop.permute.xlu1 %321 }
  0xad   :  { %v253_v31 = vpop.permute.xlu0 %252 }
  0xae   :  { %263 = vst.msk [vmem:[#allocation5 + $0x28] sm:$0x80] %vm262_vm3, %v253_v31  ;;  %vm164_vm3 = vcmask 553987  }
  0xaf   :  { %267 = vst.msk [vmem:[#allocation5 + $0x40] sm:$0x3] %vm266_vm4, %v253_v31  ;;  %vm226_vm4 = vcmask 551937  }
  0xb0   :  { %v2890_v32 = vpop.permute.xlu1 %123  ;;  %v348_v49 = vld [vmem:[#allocation5 + $0x58] sm:$0x7] }
  0xb1   :  { %v324_v33 = vpop.permute.xlu0 %323 }
  0xb2   :  { %v328_v34 = vsel %vm327_vm5, %v322_v30, %v324_v33  ;;  %v329_v35 = vsel %vm327_vm5, %v324_v33, %v326_v28 }
  0xb3   :  { %333 = vst [vmem:[#allocation5 + $0x48] sm:$0x7] %v328_v34  ;;  %334 = vst [vmem:[#allocation5 + $0x50] sm:$0x7] %v329_v35 }
  0xb4   :  { %v281_v36 = vpop.permute.xlu1 %280 }
  0xb5   :  { %291 = vst.msk [vmem:[#allocation5 + $0x40] sm:$0x1c] %vm290_vm6, %v281_v36  ;;  %v249_v37 = vpop.permute.xlu0 %248  ;;  %vm193_vm6 = vcmask 556038  }
  0xb8   :  { %v305_v38 = vpop.permute.xlu1 %304 }
  0xb9   :  { %315 = vst.msk [vmem:[#allocation5 + $0x40] sm:$0xe0] %vm314_vm7, %v305_v38  ;;  %v301_v39 = vpop.permute.xlu0 %300  ;;  %vm197_vm7 = vcmask 548864  }
  0xba   :  { %v347_v15 = vld [vmem:[#allocation5 + $0x50] sm:$0x7]  ;;  %v346_v22 = vld [vmem:[#allocation5 + $0x48] sm:$0x7] }
  0xbc   :  { %v277_v40 = vpop.permute.xlu1 %276 }
  0xbd   :  { %v122_v41 = vpop.permute.xlu0 %121 }
  0xbe   :  { %v128_v44 = vsel %vm127_vm9, %v120_v29, %v122_v41  ;;  %v129_v45 = vsel %vm127_vm9, %v122_v41, %v2890_v32 }
  0xbf   :  { %134 = vst [vmem:[#allocation5] sm:$0x7] %v128_v44  ;;  %135 = vst [vmem:[#allocation5 + $0x8] sm:$0x7] %v129_v45 }
  0xc0   :  { %v152_v46 = vpop.permute.xlu1 %151  ;;  %v345_v48 = vld [vmem:[#allocation5 + $0x40] sm:$0xff] }
  0xc1   :  { %v177_v51 = vpop.permute.xlu0 %176  ;;  %v354_v52 = vpack.c.bf16 %v348_v49, %v345_v48  ;;  %v2944_v49 = vrot.slane %v111_v43, %v85_v18 }
  0xc3   :  { %v376_v53 = vand.u32 %v2897_v50, %v354_v52 }
  0xc4   :  { %v2900_v54 = vpop.permute.xlu1 %180 }
  0xc5   :  { %v251_v55 = vpop.permute.xlu0 %250  ;;  %2328 = vmatpush3.bf16.msra.mxu1 %v376_v53 }
  0xc6   :  { %v255_v56 = vsel %vm254_vm11, %v249_v37, %v251_v55  ;;  %v256_v57 = vsel %vm254_vm11, %v251_v55, %v253_v31  ;;  %2329 = vmatprep.subr.bf16.mxu1 %v2623_v47 }
  0xc7   :  { %260 = vst [vmem:[#allocation5 + $0x30] ss:$-20 sps:$4 sm:$0x83] %v255_v56   ;;  %261 = vst [vmem:[#allocation5 + $0x38] ss:$-20 sps:$4 sm:$0x83] %v256_v57  }
  0xc8   :  { %v214_v58 = vpop.permute.xlu1 %213 }
  0xc9   :  { %v303_v59 = vpop.permute.xlu0 %302 }
  0xca   :  { %v307_v60 = vsel %vm306_vm12, %v301_v39, %v303_v59  ;;  %v308_v61 = vsel %vm306_vm12, %v303_v59, %v305_v38  ;;  %v336_v39 = vld [vmem:[%s3430_s4] sm:$0xf] }
  0xcb   :  { %312 = vst [vmem:[#allocation5 + $0x30] sm:$0xe0] %v307_v60  ;;  %313 = vst [vmem:[#allocation5 + $0x38] sm:$0xe0] %v308_v61 }
  0xcc   :  { %v148_v62 = vpop.permute.xlu1 %147 }
  0xcd   :  { %v150_v63 = vpop.permute.xlu0 %149 }
  0xce   :  { %v156_v0 = vsel %vm155_vm13, %v148_v62, %v150_v63  ;;  %v157_v1 = vsel %vm155_vm13, %v150_v63, %v152_v46 }
  0xcf   :  { %162 = vst [vmem:[#allocation5] sm:$0x38] %v156_v0  ;;  %163 = vst [vmem:[#allocation5 + $0x8] sm:$0x38] %v157_v1  ;;  %v3017_v1 = vld [vmem:[%s3440_s14 + $0x4] sm:$0x7] }
  0xd0   :  { %v279_v2 = vpop.permute.xlu1 %278 }
  0xd1   :  { %v283_v3 = vsel %vm282_vm14, %v277_v40, %v279_v2  ;;  %v284_v4 = vsel %vm282_vm14, %v279_v2, %v281_v36  ;;  %v179_v5 = vpop.permute.xlu0 %178  ;;  %v3032_v2 = vld [vmem:[%s3440_s14 + $0x4] sm:$0x7] }
  0xd2   :  { %288 = vst [vmem:[#allocation5 + $0x30] sm:$0x1c] %v283_v3  ;;  %289 = vst [vmem:[#allocation5 + $0x38] sm:$0x1c] %v284_v4  ;;  %v185_v6 = vsel %vm184_vm15, %v177_v51, %v179_v5  ;;  %v186_v7 = vsel %vm184_vm15, %v179_v5, %v2900_v54  ;;  %v3040_v3 = vld [vmem:[%s3440_s14 + $0x8] sm:$0x7] }
  0xd3   :  { %191 = vst [vmem:[#allocation5 + $0x18] ss:$-20 sps:$4 sm:$0xc1] %v185_v6   ;;  %192 = vst [vmem:[#allocation5 + $0x20] ss:$-20 sps:$4 sm:$0xc1] %v186_v7  }
  0xd4   :  { %v210_v8 = vpop.permute.xlu1 %209  ;;  %v3053_v4 = vld [vmem:[%s3440_s14 + $0x8] sm:$0x7]  ;;  %v3071_v6 = vld [vmem:[%s3440_s14 + $0xc] sm:$0x7] }
  0xd5   :  { %v212_v9 = vpop.permute.xlu0 %211  ;;  %v1583_v5 = vld [vmem:[%s3440_s14 + $0x8] sm:$0x77] }
  0xd6   :  { %v218_v11 = vsel %vm217_vm1, %v210_v8, %v212_v9  ;;  %v219_v12 = vsel %vm217_vm1, %v212_v9, %v214_v58  ;;  %v3076_v7 = vld [vmem:[%s3440_s14 + $0x8] sm:$0x7]  ;;  %v719_v8 = vld [vmem:[%s3433_s7] sm:$0xff] }
  0xd7   :  { %224 = vst [vmem:[#allocation5 + $0x18] sm:$0xe] %v218_v11  ;;  %225 = vst [vmem:[#allocation5 + $0x20] sm:$0xe] %v219_v12  ;;  %v720_v9 = vld [vmem:[%s3433_s7 + $0x8] sm:$0xff] }
  0xd8   :  { %v154_v14 = vpop.permute.xlu1 %153 }
  0xd9   :  { %v158_v16 = vsel %vm155_vm13, %v152_v46, %v154_v14  ;;  %v126_v19 = vpop.permute.xlu0 %125  ;;  %v344_v20 = vld [vmem:[#allocation5 + $0x38] sm:$0xff]  ;;  %v343_v21 = vld [vmem:[#allocation5 + $0x30] sm:$0xff] }
  0xda   :  { %165 = vst.msk [vmem:[#allocation5 + $0x10] sm:$0x38] %vm164_vm3, %v158_v16  ;;  %v130_v23 = vsel %vm127_vm9, %v2890_v32, %v126_v19  ;;  %v353_v25 = vpack.c.bf16 %v347_v15, %v344_v20  ;;  %v352_v26 = vpack.c.bf16 %v346_v22, %v343_v21  ;;  %v338_v32 = vld [vmem:[#allocation5 + $0x8] sm:$0xff]  ;;  %v337_v37 = vld [vmem:[#allocation5] sm:$0xff]  ;;  %vm740_vm3 = vcmask 1043456  }
  0xdb   :  { %136 = vst.msk [vmem:[#allocation5 + $0x10] sm:$0x7] %vm109_vm0, %v130_v23  ;;  %vm361_vm0 = vcmask 220160  }
  0xdc   :  { %v216_v27 = vpop.permute.xlu1 %215  ;;  %v373_v28 = vand.u32 %v2897_v50, %v353_v25  ;;  %v370_v29 = vand.u32 %v2897_v50, %v352_v26 }
  0xdd   :  { %v220_v30 = vsel %vm217_vm1, %v214_v58, %v216_v27  ;;  %v183_v31 = vpop.permute.xlu0 %182  ;;  %v2951_v58 = vrot.slane %v111_v43, %v89_v13  ;;  %v1334_v13 = vld [vmem:[%s3440_s14 + $0x8] sm:$0x7] }
  0xde   :  { %227 = vst.msk [vmem:[#allocation5 + $0x28] sm:$0xe] %vm226_vm4, %v220_v30  ;;  %v187_v33 = vsel %vm184_vm15, %v2900_v54, %v183_v31  ;;  %390 = vmatprep.subr.bf16.mxu0 %v373_v28  ;;  %v341_v34 = vld [vmem:[#allocation5 + $0x20] sm:$0xff]  ;;  %v340_v35 = vld [vmem:[#allocation5 + $0x18] sm:$0xff]  ;;  %vm1499_vm4 = vcmask 477592  }
  0xdf   :  { %194 = vst.msk [vmem:[#allocation5 + $0x10] sm:$0xc0] %vm193_vm6, %v187_v33  ;;  %391 = vmatpush1.bf16.msra.mxu0 %v370_v29  ;;  %v350_v36 = vpack.c.bf16 %v341_v34, %v338_v32  ;;  %v349_v38 = vpack.c.bf16 %v340_v35, %v337_v37  ;;  %vm1575_vm6 = vcmask 559592  }
  0xe0   :  { %198 = vst.msk [vmem:[#allocation5 + $0x28] sm:$0x1] %vm197_vm7, %v187_v33  ;;  %v573_v11 = vpop.permute.xlu1 %572  ;;  %vm1657_vm7 = vcmask 641592  }
  0xe1   :  { %392 = vmatprep.subr.bf16.mxu0 %v350_v36 }
  0xe3   :  { %393 = vmatpush1.bf16.msra.mxu0 %v349_v38 }
  0xe4   :  { %v3092_v14 = vpop.permute.xlu1 %522 }
  0xe6   :  { %v339_v40 = vld [vmem:[#allocation5 + $0x10] sm:$0xff]  ;;  %2255 = vmatmul.mubr.msk.bf16.vlgmr.msra.gmra.mxu0 %vm361_vm0, %v336_v39 }
  0xe7   :  { %v342_v41 = vld [vmem:[#allocation5 + $0x28] sm:$0xff]  ;;  %782 = vmatprep.mubr.bf16.mxu0 %v2628_v24  ;;  %v2940_v24 = vrot.slane %v111_v43, %v81_v17 }
  0xe8   :  { %v351_v42 = vpack.c.bf16 %v342_v41, %v339_v40 }
  0xea   :  { %2330 = vmatpush3.bf16.msra.mxu1 %v351_v42  ;;  %v359_v44 = vpop.permute.xlu0 %358 }
  0xeb   :  { %2335 = vmatprep.subr.bf16.mxu1 %v2623_v47 }
  0xed   :  { %2332 = vmatmul.mubr.msk.bf16.vlgmr.msra.gmra.mxu1 %vm361_vm0, %v336_v39 }
  0xee   :  { %2345 = vmatprep.mubr.msk.bf16.mxu1 %vm2629_vm2, %v2623_v47  ;;  %v548_v12 = vpop.permute.xlu0 %547 }
  0xf2   :  { %v3094_v15 = vpop.permute.xlu0 %497 }
 0x1a6   :  { %v412_v45 = vpop.f32.mrf.mxu0 }
 0x1a7   :  { %v413_v46 = vadd.f32 %v412_v45, %v359_v44 }
 0x1a8   :  { %v414_v48 = vpop.f32.mrf.mxu0 }
 0x1a9   :  { %v415_v51 = vadd.f32 %v414_v48, %v359_v44  ;;  %v459_v52 = vmax.f32 %v413_v46, 0.0 }
 0x1aa   :  { %v416_v53 = vpop.f32.mrf.mxu0 }
 0x1ab   :  { %v460_v54 = vmax.f32 %v415_v51, 0.0  ;;  %v2947_v55 = vmul.f32 %v2940_v24, %v459_v52 }
 0x1ac   :  { %v417_v57 = vpop.f32.mrf.mxu0 }
 0x1ad   :  { %v453_v56 = vpop.f32.mrf.mxu1  ;;  %v2954_v59 = vmul.f32 %v2944_v49, %v460_v54 }
 0x1ae   :  { %v454_v17 = vadd.f32 %v453_v56, %v359_v44 }
 0x1af   :  { %v2333_v60 = vpop.f32.mrf.mxu1 }
 0x1b0   :  { %v461_v18 = vmax.f32 %v454_v17, 0.0 }
 0x1b1   :  { %v456_v61 = vpop.f32.mrf.mxu1 }
 0x1b2   :  { %v2957_v62 = vmul.f32 %v2951_v58, %v461_v18 }
 0x1b3   :  { %v2334_v63 = vpop.f32.mrf.mxu1 }
 0x1b4   :  { %488 = vst.msk [vmem:[#allocation3 + $0x18] sm:$0xff] %vm484_vm10, %v2957_v62 }
 0x1bb   :  { %v657_v0 = vld [vmem:[#allocation3 + $0x18] sm:$0xff] }
 0x1bc   :  { %665 = vrot.lane.b32.xlu0 %v657_v0, %s2619_s19  ;;  %578 = vrot.lane.b32.xlu1 %v657_v0, %s2627_s20  ;;  %594 = vst.msk [vmem:[#allocation6 + $0x70] sm:$0xff] %vm484_vm10, %v657_v0 }
 0x1c0   :  { %625 = vrot.lane.b32.xlu0 %v657_v0, %s2622_s23  ;;  %661 = vrot.lane.b32.xlu1 %v2947_v55, %s2619_s19 }
 0x1c3   :  { %v691_v41 = vld [vmem:[#allocation6 + $0x70] sm:$0xff] }
 0x1c4   :  { %645 = vrot.lane.b32.xlu0 %v657_v0, %s2624_s27  ;;  %621 = vrot.lane.b32.xlu1 %v2947_v55, %s2622_s23 }
 0x1c8   :  { %605 = vrot.lane.b32.xlu0 %v657_v0, %s2621_s24  ;;  %601 = vrot.lane.b32.xlu1 %v2947_v55, %s2621_s24 }
 0x1cc   :  { %553 = vrot.lane.b32.xlu0 %v657_v0, %s2626_s25  ;;  %663 = vrot.lane.b32.xlu1 %v2954_v59, %s2619_s19 }
 0x1d0   :  { %641 = vrot.lane.b32.xlu0 %v2947_v55, %s2624_s27  ;;  %623 = vrot.lane.b32.xlu1 %v2954_v59, %s2622_s23  ;;  %s2642_s23 = smov 61  }
 0x1d4   :  { %643 = vrot.lane.b32.xlu1 %v2954_v59, %s2624_s27  ;;  %549 = vrot.lane.b32.xlu0 %v2947_v55, %s2626_s25 }
 0x1d8   :  { %603 = vrot.lane.b32.xlu1 %v2954_v59, %s2621_s24  ;;  %574 = vrot.lane.b32.xlu0 %v2947_v55, %s2627_s20 }
 0x1dc   :  { %551 = vrot.lane.b32.xlu1 %v2954_v59, %s2626_s25  ;;  %499 = vrot.lane.b32.xlu0 %v2947_v55, %s2620_s21  ;;  %s2643_s25 = smov 81  }
 0x1e0   :  { %576 = vrot.lane.b32.xlu1 %v2954_v59, %s2627_s20  ;;  %524 = vrot.lane.b32.xlu0 %v2947_v55, %s2625_s2 }
 0x1e4   :  { %501 = vrot.lane.b32.xlu1 %v2954_v59, %s2620_s21  ;;  %503 = vrot.lane.b32.xlu0 %v657_v0, %s2620_s21  ;;  %s2634_s21 = smov 57  }
 0x1e8   :  { %526 = vrot.lane.b32.xlu1 %v2954_v59, %s2625_s2  ;;  %1107 = vrot.lane.b32.xlu0 %v3002_v10, %s2621_s24 }
 0x1ec   :  { %528 = vrot.lane.b32.xlu1 %v657_v0, %s2625_s2  ;;  %1111 = vrot.lane.b32.xlu0 %v3002_v10, %s2624_s27  ;;  %s2636_s2 = smov 113  }
 0x1f0   :  { %1336 = vrot.lane.b32.xlu0 %v1334_v13, %s2621_s24  ;;  %1183 = vrot.lane.b32.xlu1 %v3017_v1, %s2621_s24 }
 0x1f4   :  { %1191 = vrot.lane.b32.xlu0 %v3017_v1, %s2619_s19  ;;  %1187 = vrot.lane.b32.xlu1 %v3017_v1, %s2624_s27 }
 0x1f8   :  { %1348 = vrot.lane.b32.xlu0 %v1334_v13, %s2619_s19  ;;  %1115 = vrot.lane.b32.xlu1 %v3002_v10, %s2619_s19 }
 0x1fc   :  { %1263 = vrot.lane.b32.xlu0 %v3032_v2, %s2624_s27  ;;  %1342 = vrot.lane.b32.xlu1 %v1334_v13, %s2624_s27 }
 0x200   :  { %1427 = vrot.lane.b32.xlu0 %v3040_v3, %s2621_s24  ;;  %1259 = vrot.lane.b32.xlu1 %v3032_v2, %s2621_s24 }
 0x204   :  { %1431 = vrot.lane.b32.xlu0 %v3040_v3, %s2624_s27  ;;  %1267 = vrot.lane.b32.xlu1 %v3032_v2, %s2619_s19 }
 0x208   :  { %1435 = vrot.lane.b32.xlu0 %v3040_v3, %s2619_s19  ;;  %1503 = vrot.lane.b32.xlu1 %v3053_v4, %s2621_s24 }
 0x20c   :  { %1585 = vrot.lane.b32.xlu0 %v1583_v5, %s2624_s27  ;;  %1507 = vrot.lane.b32.xlu1 %v3053_v4, %s2624_s27 }
 0x210   :  { %1591 = vrot.lane.b32.xlu0 %v1583_v5, %s2619_s19  ;;  %1511 = vrot.lane.b32.xlu1 %v3053_v4, %s2619_s19 }
 0x214   :  { %1665 = vrot.lane.b32.xlu0 %v3071_v6, %s2624_s27  ;;  %1579 = vrot.lane.b32.xlu1 %v3076_v7, %s2621_s24  ;;  %s2638_s27 = smov 31  }
 0x218   :  { %723 = vperm.xlu0 %2489, %v719_v8   ;;  %1661 = vrot.lane.b32.xlu1 %v3071_v6, %s2621_s24 }
 0x21c   :  { %1669 = vrot.lane.b32.xlu1 %v3071_v6, %s2619_s19 }
 0x220   :  { %728 = vperm.xlu1 %2490, %v720_v9  }
 0x22e   :  { %v3096_v16 = vpop.permute.xlu1 %578  ;;  %v666_v19 = vpop.permute.xlu0 %665 }
 0x22f   :  { %674 = vst.msk [vmem:[#allocation6 + $0xd0] sm:$0xff] %vm484_vm10, %v666_v19 }
 0x232   :  { %v662_v20 = vpop.permute.xlu1 %661  ;;  %v626_v21 = vpop.permute.xlu0 %625 }
 0x233   :  { %634 = vst.msk [vmem:[#allocation6 + $0xa0] sm:$0xff] %vm484_vm10, %v626_v21 }
 0x236   :  { %v622_v22 = vpop.permute.xlu1 %621  ;;  %v646_v23 = vpop.permute.xlu0 %645  ;;  %v703_v25 = vld [vmem:[#allocation6 + $0xd0] sm:$0xff] }
 0x237   :  { %654 = vst.msk [vmem:[#allocation6 + $0xb8] sm:$0xff] %vm484_vm10, %v646_v23  ;;  %v718_v26 = vpack.c.bf16 %v703_v25, %v703_v25 }
 0x239   :  { %v748_v27 = vsel %vm740_vm3, %v718_v26, 0 }
 0x23a   :  { %v602_v28 = vpop.permute.xlu1 %601  ;;  %2336 = vmatpush3.bf16.msra.mxu1 %v748_v27  ;;  %v606_v29 = vpop.permute.xlu0 %605  ;;  %v697_v33 = vld [vmem:[#allocation6 + $0xa0] sm:$0xff] }
 0x23b   :  { %614 = vst.msk [vmem:[#allocation6 + $0x88] sm:$0xff] %vm484_vm10, %v606_v29  ;;  %2337 = vmatprep.subr.bf16.mxu1 %v2623_v47 }
 0x23e   :  { %v664_v30 = vpop.permute.xlu1 %663  ;;  %v554_v31 = vpop.permute.xlu0 %553  ;;  %v700_v32 = vld [vmem:[#allocation6 + $0xb8] sm:$0xff] }
 0x23f   :  { %v667_v34 = vsel %vm327_vm5, %v662_v20, %v664_v30  ;;  %v668_v35 = vsel %vm327_vm5, %v664_v30, %v666_v19  ;;  %v715_v36 = vpack.c.bf16 %v700_v32, %v697_v33 }
 0x240   :  { %v717_v37 = vpack.c.bf16 %v668_v35, %v668_v35  ;;  %v716_v38 = vpack.c.bf16 %v667_v34, %v667_v34 }
 0x241   :  { %2338 = vmatpush3.bf16.msra.mxu1 %v715_v36 }
 0x242   :  { %v624_v39 = vpop.permute.xlu1 %623  ;;  %v642_v40 = vpop.permute.xlu0 %641  ;;  %2339 = vmatprep.subr.bf16.mxu1 %v2623_v47  ;;  %v694_v42 = vld [vmem:[#allocation6 + $0x88] sm:$0xff]  ;;  %2258 = vmatprep.subr.msk.bf16.mxu0 %vm740_vm3, %v717_v37  ;;  %v742_v43 = vsel %vm740_vm3, %v716_v38, 0  ;;  %v884_v38 = vpack.c.bf16 %v2954_v59, %v2954_v59 }
 0x243   :  { %v627_v44 = vsel %vm282_vm14, %v622_v22, %v624_v39  ;;  %v628_v45 = vsel %vm282_vm14, %v624_v39, %v626_v21  ;;  %v712_v46 = vpack.c.bf16 %v694_v42, %v691_v41  ;;  %757 = vmatpush1.bf16.msra.mxu0 %v742_v43  ;;  %v2505_v39 = vld [vmem:[%s3432_s6] sm:$0xff]   ;;  %v883_v41 = vpack.c.bf16 %v2947_v55, %v2947_v55 }
 0x244   :  { %vm1331_vm14 = vcmask 313592  }
 0x245   :  { %2340 = vmatpush3.bf16.msra.mxu1 %v712_v46 }
 0x246   :  { %v644_v48 = vpop.permute.xlu1 %643  ;;  %v550_v51 = vpop.permute.xlu0 %549  ;;  %2341 = vmatprep.subr.bf16.mxu1 %v2623_v47 }
 0x247   :  { %v647_v52 = vsel %vm306_vm12, %v642_v40, %v644_v48  ;;  %v648_v53 = vsel %vm306_vm12, %v644_v48, %v646_v23  ;;  %v555_v54 = vsel %vm184_vm15, %v548_v12, %v550_v51 }
 0x248   :  { %v714_v56 = vpack.c.bf16 %v648_v53, %v628_v45  ;;  %v713_v57 = vpack.c.bf16 %v647_v52, %v627_v44 }
 0x24a   :  { %v604_v17 = vpop.permute.xlu1 %603  ;;  %v575_v60 = vpop.permute.xlu0 %574  ;;  %758 = vmatprep.subr.bf16.mxu0 %v714_v56 }
 0x24b   :  { %v607_v18 = vsel %vm254_vm11, %v602_v28, %v604_v17  ;;  %v608_v61 = vsel %vm254_vm11, %v604_v17, %v606_v29  ;;  %v580_v63 = vsel %vm217_vm1, %v573_v11, %v575_v60  ;;  %759 = vmatpush1.bf16.msra.mxu0 %v713_v57 }
 0x24c   :  { %v711_v0 = vpack.c.bf16 %v608_v61, %v2954_v59  ;;  %v710_v13 = vpack.c.bf16 %v607_v18, %v2947_v55  ;;  %v707_v26 = vpack.c.bf16 %v580_v63, %v555_v54  ;;  %v885_v55 = vpack.c.bf16 %v2957_v62, %v2957_v62 }
 0x24e   :  { %v552_v5 = vpop.permute.xlu1 %551  ;;  %v500_v8 = vpop.permute.xlu0 %499  ;;  %760 = vmatprep.subr.bf16.mxu0 %v711_v0  ;;  %v887_v63 = vsel %vm484_vm10, %v885_v55, 0 }
 0x24f   :  { %v556_v9 = vsel %vm184_vm15, %v550_v51, %v552_v5  ;;  %v557_v12 = vsel %vm184_vm15, %v552_v5, %v554_v31  ;;  %v505_v19 = vsel %vm127_vm9, %v3094_v15, %v500_v8  ;;  %761 = vmatpush1.bf16.msra.mxu0 %v710_v13  ;;  %vm1423_vm15 = vcmask 395592  }
 0x250   :  { %563 = vst.msk [vmem:[#allocation6 + $0x40] sm:$0xff] %vm484_vm10, %v557_v12 }
 0x252   :  { %v577_v20 = vpop.permute.xlu1 %576  ;;  %v525_v11 = vpop.permute.xlu0 %524 }
 0x253   :  { %v581_v21 = vsel %vm217_vm1, %v575_v60, %v577_v20  ;;  %v582_v22 = vsel %vm217_vm1, %v577_v20, %v3096_v16  ;;  %v530_v23 = vsel %vm155_vm13, %v3092_v14, %v525_v11 }
 0x254   :  { %588 = vst.msk [vmem:[#allocation6 + $0x58] sm:$0xff] %vm484_vm10, %v582_v22  ;;  %v708_v25 = vpack.c.bf16 %v581_v21, %v556_v9  ;;  %v704_v35 = vpack.c.bf16 %v530_v23, %v505_v19 }
 0x256   :  { %v502_v27 = vpop.permute.xlu1 %501  ;;  %v504_v28 = vpop.permute.xlu0 %503  ;;  %762 = vmatprep.subr.bf16.mxu0 %v708_v25 }
 0x257   :  { %v506_v15 = vsel %vm127_vm9, %v500_v8, %v502_v27  ;;  %v507_v29 = vsel %vm127_vm9, %v502_v27, %v504_v28  ;;  %763 = vmatpush1.bf16.msra.mxu0 %v707_v26  ;;  %v685_v33 = vld [vmem:[#allocation6 + $0x40] sm:$0xff]  ;;  %vm736_vm9 = vcmask 588800  }
 0x258   :  { %513 = vst.msk [vmem:[#allocation6 + $0x10] sm:$0xff] %vm484_vm10, %v507_v29 }
 0x25a   :  { %v527_v30 = vpop.permute.xlu1 %526  ;;  %v1108_v31 = vpop.permute.xlu0 %1107 }
 0x25b   :  { %v531_v16 = vsel %vm155_vm13, %v525_v11, %v527_v30  ;;  %v688_v14 = vld [vmem:[#allocation6 + $0x58] sm:$0xff]  ;;  %v1110_v43 = vadd.f32 %v1108_v31, %v3002_v10 }
 0x25c   :  { %v709_v32 = vpack.c.bf16 %v688_v14, %v685_v33  ;;  %v705_v34 = vpack.c.bf16 %v531_v16, %v506_v15 }
 0x25e   :  { %v529_v36 = vpop.permute.xlu1 %528  ;;  %2342 = vmatpush3.bf16.msra.mxu1 %v709_v32  ;;  %764 = vmatprep.subr.bf16.mxu0 %v705_v34  ;;  %v1112_v37 = vpop.permute.xlu0 %1111 }
 0x25f   :  { %v532_v40 = vsel %vm155_vm13, %v527_v30, %v529_v36  ;;  %765 = vmatpush1.bf16.msra.mxu0 %v704_v35  ;;  %2343 = vmatprep.subr.bf16.mxu1 %v2623_v47  ;;  %v1114_v48 = vadd.f32 %v1112_v37, %v1110_v43  ;;  %v679_v51 = vld [vmem:[#allocation6 + $0x10] sm:$0xff]  ;;  %vm1255_vm13 = vcmask 231592  }
 0x260   :  { %538 = vst.msk [vmem:[#allocation6 + $0x28] sm:$0xff] %vm484_vm10, %v532_v40  ;;  %903 = vmatprep.subr.bf16.mxu0 %v884_v38 }
 0x262   :  { %2259 = vmatmul.mubr.msk.bf16.vlgmr.msra.gmra.mxu0 %vm736_vm9, %v2505_v39  ;;  %v1337_v42 = vpop.permute.xlu0 %1336  ;;  %v1184_v59 = vpop.permute.xlu1 %1183 }
 0x263   :  { %904 = vmatpush1.bf16.xpose.msra.mxu0 %v883_v41  ;;  %921 = vmatprep.mubr.bf16.mxu0 %v884_v38  ;;  %v1186_v44 = vadd.f32 %v1184_v59, %v3017_v1  ;;  %v1338_v53 = vrot.slane %v1337_v42, 4  ;;  %v1333_v1 = vld [vmem:[%s3440_s14 + $0x4] sm:$0x77]  ;;  %s2631_s14 = smov 73  }
 0x265   :  { %v1339_v60 = vsel %vm254_vm11, %v1338_v53, %v1337_v42  ;;  %vm1103_vm11 = vcmask 813056  }
 0x266   :  { %v1192_v45 = vpop.permute.xlu0 %1191  ;;  %v1188_v46 = vpop.permute.xlu1 %1187  ;;  %v1341_v5 = vadd.f32 %v1339_v60, %v1333_v1 }
 0x267   :  { %v682_v52 = vld [vmem:[#allocation6 + $0x28] sm:$0xff]  ;;  %v1190_v54 = vadd.f32 %v1188_v46, %v1186_v44 }
 0x268   :  { %v706_v56 = vpack.c.bf16 %v682_v52, %v679_v51 }
 0x269   :  { %v1194_v57 = vadd.f32 %v1192_v45, %v1190_v54 }
 0x26a   :  { %2344 = vmatpush3.bf16.msra.mxu1 %v706_v56  ;;  %922 = vmatmul.mubr.bf16.vlgmr.msra.gmra.mxu0 %v883_v41  ;;  %v1349_v17 = vpop.permute.xlu0 %1348  ;;  %v1116_v10 = vpop.permute.xlu1 %1115 }
 0x26b   :  { %2349 = vmatprep.subr.bf16.mxu1 %v2623_v47  ;;  %v1195_v18 = vmul.f32 0.25, %v1194_v57  ;;  %v1118_v61 = vadd.f32 %v1116_v10, %v1114_v48  ;;  %v1350_v62 = vrot.slane %v1349_v17, 4 }
 0x26d   :  { %2346 = vmatmul.mubr.msk.bf16.vlgmr.msra.gmra.mxu1 %vm736_vm9, %v2505_v39  ;;  %v1196_v0 = vpack.c.bf16 %v1195_v18, %v1195_v18  ;;  %v1119_v13 = vmul.f32 0.25, %v1118_v61  ;;  %v1351_v20 = vsel %vm327_vm5, %v1350_v62, %v1349_v17 }
 0x26e   :  { %2350 = vmatpush3.bf16.xpose.msra.mxu1 %v887_v63  ;;  %2351 = vmatprep.mubr.msk.bf16.mxu1 %vm2629_vm2, %v2623_v47  ;;  %v1264_v8 = vpop.permute.xlu0 %1263  ;;  %v1343_v9 = vpop.permute.xlu1 %1342 }
 0x26f   :  { %v1120_v12 = vpack.c.bf16 %v1119_v13, %v1119_v13  ;;  %v1344_v19 = vrot.slane %v1343_v9, 4  ;;  %1200 = vrot.lane.b32.xlu1 %v1196_v0, %s2631_s14  ;;  %2355 = vmatprep.subr.bf16.mxu1 %v2623_v47  ;;  %s2644_s14 = smov 119  }
 0x271   :  { %v1345_v11 = vsel %vm306_vm12, %v1344_v19, %v1343_v9  ;;  %1124 = vrot.lane.b32.xlu0 %v1120_v12, %s2619_s19  ;;  %s2632_s19 = smov 37   ;;  %v846_v12 = vld [vmem:[%s3434_s8] sm:$0xff] }
 0x272   :  { %v1428_v21 = vpop.permute.xlu0 %1427  ;;  %v1347_v22 = vadd.f32 %v1345_v11, %v1341_v5  ;;  %v1260_v23 = vpop.permute.xlu1 %1259 }
 0x273   :  { %v1430_v25 = vadd.f32 %v1428_v21, %v3040_v3  ;;  %v1262_v26 = vadd.f32 %v1260_v23, %v3032_v2 }
 0x274   :  { %v1353_v27 = vadd.f32 %v1351_v20, %v1347_v22  ;;  %v847_v22 = vld [vmem:[%s3434_s8 + $0x8] sm:$0xff] }
 0x275   :  { %2352 = vmatmul.mubr.msk.bf16.vlgmr.msra.gmra.mxu1 %vm484_vm10, %v885_v55  ;;  %v1266_v28 = vadd.f32 %v1264_v8, %v1262_v26 }
 0x276   :  { %v1432_v15 = vpop.permute.xlu0 %1431  ;;  %v1354_v29 = vmul.f32 0.25, %v1353_v27  ;;  %v1268_v30 = vpop.permute.xlu1 %1267  ;;  %2357 = vmatprep.mubr.msk.bf16.mxu1 %vm2629_vm2, %v2623_v47 }
 0x277   :  { %v1434_v31 = vadd.f32 %v1432_v15, %v1430_v25  ;;  %v1270_v16 = vadd.f32 %v1268_v30, %v1266_v28 }
 0x278   :  { %v1358_v33 = vpack.c.bf16 %v1354_v29, %v1354_v29  ;;  %v1356_v32 = vcombine.high %v1354_v29, %v1354_v29 }
 0x279   :  { %v1271_v14 = vmul.f32 0.25, %v1270_v16 }
 0x27a   :  { %v1436_v34 = vpop.permute.xlu0 %1435  ;;  %1364 = vrot.lane.b32.xlu1 %v1358_v33, %s2627_s20  ;;  %v1504_v3 = vpop.permute.xlu1 %1503  ;;  %v1359_v38 = vpack.c.bf16 %v1356_v32, %v1356_v32 }
 0x27b   :  { %v1438_v2 = vadd.f32 %v1436_v34, %v1434_v31  ;;  %v1272_v35 = vpack.c.bf16 %v1271_v14, %v1271_v14  ;;  %v1506_v36 = vadd.f32 %v1504_v3, %v3053_v4 }
 0x27d   :  { %v1439_v37 = vmul.f32 0.25, %v1438_v2  ;;  %1276 = vrot.lane.b32.xlu0 %v1272_v35, %s2632_s19  ;;  %s2645_s19 = smov 117  }
 0x27e   :  { %v1586_v39 = vpop.permute.xlu0 %1585  ;;  %v1508_v40 = vpop.permute.xlu1 %1507 }
 0x27f   :  { %v1440_v47 = vpack.c.bf16 %v1439_v37, %v1439_v37  ;;  %v1510_v41 = vadd.f32 %v1508_v40, %v1506_v36  ;;  %v1587_v42 = vrot.slane %v1586_v39, 4 }
 0x281   :  { %1366 = vrot.lane.b32.xlu0 %v1359_v38, %s2627_s20  ;;  %1444 = vrot.lane.b32.xlu1 %v1440_v47, %s2633_s0  ;;  %v1588_v4 = vsel %vm306_vm12, %v1586_v39, %v1587_v42  ;;  %v848_v47 = vld [vmem:[%s3434_s8 + $0x10] sm:$0xff]  ;;  %vm1179_vm12 = vcmask 149592   ;;  %s2646_s0 = smov 118  }
 0x282   :  { %v1512_v59 = vpop.permute.xlu1 %1511  ;;  %v1592_v43 = vpop.permute.xlu0 %1591 }
 0x283   :  { %v1514_v44 = vadd.f32 %v1512_v59, %v1510_v41  ;;  %v1593_v45 = vrot.slane %v1592_v43, 4 }
 0x285   :  { %v1515_v46 = vmul.f32 0.25, %v1514_v44  ;;  %v1594_v53 = vsel %vm327_vm5, %v1592_v43, %v1593_v45  ;;  %v3193_v43 = vld [vmem:[#allocation3] sm:$0xff]  ;;  %v850_v45 = vld [vmem:[%s3434_s8 + $0x20] sm:$0xff]  ;;  %vm1085_vm5 = vcmask 130048  }
 0x286   :  { %v1580_v48 = vpop.permute.xlu1 %1579  ;;  %v1666_v17 = vpop.permute.xlu0 %1665 }
 0x287   :  { %v1516_v51 = vpack.c.bf16 %v1515_v46, %v1515_v46  ;;  %v1582_v52 = vadd.f32 %v1580_v48, %v3076_v7  ;;  %v851_v48 = vld [vmem:[%s3434_s8 + $0x28] sm:$0xff] }
 0x289   :  { %v1590_v54 = vadd.f32 %v1588_v4, %v1582_v52  ;;  %1520 = vrot.lane.b32.xlu0 %v1516_v51, %s2634_s21  ;;  %s2647_s21 = smov 10  }
 0x28a   :  { %v1662_v56 = vpop.permute.xlu1 %1661 }
 0x28b   :  { %v1596_v55 = vadd.f32 %v1594_v53, %v1590_v54  ;;  %v1664_v57 = vadd.f32 %v1662_v56, %v3071_v6  ;;  %v2506_v56 = vld [vmem:[%s3429_s3] sm:$0xff]  }
 0x28d   :  { %v1668_v10 = vadd.f32 %v1666_v17, %v1664_v57  ;;  %v1597_v1 = vmul.f32 0.25, %v1596_v55 }
 0x28e   :  { %v1670_v60 = vpop.permute.xlu1 %1669 }
 0x28f   :  { %v1672_v18 = vadd.f32 %v1670_v60, %v1668_v10  ;;  %v1598_v61 = vpack.c.bf16 %v1597_v1, %v1597_v1 }
 0x291   :  { %v1673_v63 = vmul.f32 0.25, %v1672_v18  ;;  %1602 = vrot.lane.b32.xlu1 %v1598_v61, %s2635_s1 }
 0x293   :  { %v1674_v7 = vpack.c.bf16 %v1673_v63, %v1673_v63  ;;  %v724_v62 = vpop.permute.xlu0 %723 }
 0x295   :  { %1678 = vrot.lane.b32.xlu0 %v1674_v7, %s2636_s2  ;;  %s2648_s2 = smov 9  }
 0x29b   :  { %v729_v8 = vpop.permute.xlu1 %728 }
 0x322   :  { %v784_v0 = vpop.f32.mrf.mxu0 }
 0x323   :  { %v785_v13 = vadd.f32 %v784_v0, %v724_v62 }
 0x324   :  { %v786_v5 = vpop.f32.mrf.mxu0 }
 0x325   :  { %v834_v9 = vmax.f32 %v785_v13, 0.0  ;;  %v787_v6 = vadd.f32 %v786_v5, %v724_v62  ;;  %v2508_v5 = vld [vmem:[%s3429_s3] sm:$0xff]  }
 0x326   :  { %v788_v19 = vpop.f32.mrf.mxu0 }
 0x327   :  { %v840_v20 = vmul.f32 %v834_v9, %v2940_v24  ;;  %v835_v11 = vmax.f32 %v787_v6, 0.0  ;;  %v789_v21 = vadd.f32 %v788_v19, %v729_v8  ;;  %v2507_v9 = vld [vmem:[%s3429_s3] sm:$0xff]   ;;  %v1201_v19 = vpop.permute.xlu1 %1200 }
 0x328   :  { %v790_v23 = vpop.f32.mrf.mxu0 }
 0x329   :  { %v852_v25 = vsub.f32 %v840_v20, %v846_v12  ;;  %v841_v26 = vmul.f32 %v835_v11, %v2944_v49  ;;  %v837_v27 = vmax.f32 %v789_v21, 0.0  ;;  %v791_v28 = vadd.f32 %v790_v23, %v729_v8  ;;  %v1125_v12 = vpop.permute.xlu0 %1124  ;;  %v2509_v11 = vld [vmem:[%s3429_s3] sm:$0xff]  }
 0x32a   :  { %v923_v15 = vpop.f32.mrf.mxu0 }
 0x32b   :  { %v853_v29 = vsub.f32 %v841_v26, %v847_v22  ;;  %v838_v30 = vmax.f32 %v791_v28, 0.0  ;;  %v843_v31 = vmul.f32 %v837_v27, %v2940_v24  ;;  %v858_v33 = vmul.f32 %v852_v25, %v852_v25  ;;  %v1365_v22 = vpop.permute.xlu1 %1364  ;;  %v2511_v27 = vld [vmem:[%s3429_s3] sm:$0xff]  }
 0x32c   :  { %v925_v16 = vpop.f32.mrf.mxu0 }
 0x32d   :  { %v859_v14 = vmul.f32 %v853_v29, %v853_v29  ;;  %v827_v32 = vpop.f32.mrf.mxu1  ;;  %v844_v34 = vmul.f32 %v838_v30, %v2944_v49  ;;  %v973_v39 = vpack.c.bf16 %v843_v31, %v840_v20  ;;  %v849_v49 = vld [vmem:[%s3434_s8 + $0x18] sm:$0xff]  ;;  %v2510_v20 = vld [vmem:[%s3429_s3] sm:$0xff]   ;;  %v1277_v21 = vpop.permute.xlu0 %1276 }
 0x32e   :  { %v828_v3 = vadd.f32 %v827_v32, %v724_v62  ;;  %v926_v2 = vpop.f32.mrf.mxu0  ;;  %v855_v4 = vsub.f32 %v843_v31, %v849_v49  ;;  %v2513_v29 = vld [vmem:[%s3429_s3] sm:$0xff]   ;;  %v1065_v49 = vld [vmem:[%s3436_s10 + $0x8] sm:$0xff] }
 0x32f   :  { %v864_v35 = vadd.f32 %v859_v14, %v858_v33  ;;  %v2347_v36 = vpop.f32.mrf.mxu1  ;;  %v974_v37 = vpack.c.bf16 %v844_v34, %v841_v26  ;;  %v856_v55 = vsub.f32 %v844_v34, %v850_v45  ;;  %v1445_v25 = vpop.permute.xlu1 %1444  ;;  %v2512_v26 = vld [vmem:[%s3429_s3] sm:$0xff]   ;;  %s2637_s3 = smov 11  }
 0x330   :  { %v836_v38 = vmax.f32 %v828_v3, 0.0  ;;  %v927_v40 = vpop.f32.mrf.mxu0  ;;  %v861_v18 = vmul.f32 %v855_v4, %v855_v4  ;;  %v1064_v36 = vld [vmem:[%s3436_s10] sm:$0xff]  ;;  %s2639_s10 = smov 51  }
 0x331   :  { %v830_v41 = vpop.f32.mrf.mxu1  ;;  %993 = vmatprep.subr.bf16.mxu0 %v974_v37  ;;  %1011 = vmatprep.mubr.bf16.mxu0 %v974_v37  ;;  %v862_v62 = vmul.f32 %v856_v55, %v856_v55  ;;  %v1367_v23 = vpop.permute.xlu0 %1366 }
 0x332   :  { %v842_v24 = vmul.f32 %v836_v38, %v2951_v58  ;;  %v831_v42 = vadd.f32 %v830_v41, %v729_v8  ;;  %994 = vmatpush1.bf16.xpose.msra.mxu0 %v973_v39  ;;  %v1369_v28 = vsel %vm217_vm1, %v1365_v22, %v1367_v23 }
 0x333   :  { %v2348_v59 = vpop.f32.mrf.mxu1  ;;  %2361 = vmatprep.subr.bf16.mxu0 %v3193_v43 }
 0x334   :  { %v854_v44 = vsub.f32 %v842_v24, %v848_v47  ;;  %v839_v46 = vmax.f32 %v831_v42, 0.0 }
 0x335   :  { %v963_v51 = vpop.f32.mrf.mxu1  ;;  %v1521_v30 = vpop.permute.xlu0 %1520 }
 0x336   :  { %v860_v52 = vmul.f32 %v854_v44, %v854_v44  ;;  %v845_v53 = vmul.f32 %v839_v46, %v2951_v58  ;;  %v3203_v54 = vadd.f32 %v963_v51, %v923_v15  ;;  %v1603_v15 = vpop.permute.xlu1 %1602 }
 0x337   :  { %v2353_v57 = vpop.f32.mrf.mxu1 }
 0x338   :  { %v865_v17 = vsel %vm484_vm10, %v860_v52, 0.0  ;;  %v857_v10 = vsub.f32 %v845_v53, %v851_v48  ;;  %v975_v1 = vpack.c.bf16 %v845_v53, %v842_v24 }
 0x339   :  { %v866_v60 = vadd.f32 %v865_v17, %v864_v35  ;;  %v966_v61 = vpop.f32.mrf.mxu1  ;;  %1012 = vmatmul.mubr.bf16.vlgmr.msra.gmra.mxu0 %v973_v39  ;;  %v1679_v31 = vpop.permute.xlu0 %1678 }
 0x33a   :  { %v863_v63 = vmul.f32 %v857_v10, %v857_v10  ;;  %v977_v7 = vsel %vm484_vm10, %v975_v1, 0  ;;  %2362 = vmatpush3.bf16.msra.mxu0 %v2506_v56  ;;  %2363 = vmatprep.mubr.msk.bf16.mxu0 %vm2629_vm2, %v3193_v43 }
 0x33b   :  { %v867_v58 = vadd.f32 %v866_v60, %v861_v18  ;;  %v2354_v0 = vpop.f32.mrf.mxu1  ;;  %2356 = vmatpush3.bf16.xpose.msra.mxu1 %v977_v7  ;;  %2373 = vmatprep.subr.bf16.mxu0 %v3193_v43 }
 0x33c   :  { %2367 = vmatprep.subr.bf16.mxu1 %v3193_v43  ;;  %v869_v8 = vsel %vm484_vm10, %v863_v63, 0.0 }
 0x33d   :  { %v868_v13 = vadd.f32 %v867_v58, %v862_v62 }
 0x33f   :  { %v3221_v6 = vadd.f32 %v869_v8, %v868_v13 }
 0x341   :  { %2364 = vmatmul.mubr.msk.bf16.vlgmr.msra.gmra.mxu0 %vm1085_vm5, %v1125_v12 }
 0x342   :  { %2358 = vmatmul.mubr.msk.bf16.vlgmr.msra.gmra.mxu1 %vm484_vm10, %v975_v1  ;;  %2374 = vmatpush3.bf16.msra.mxu0 %v2508_v5  ;;  %vm1742_vm10 = vcmask 89088  }
 0x343   :  { %2368 = vmatpush3.bf16.msra.mxu1 %v2507_v9  ;;  %2369 = vmatprep.mubr.msk.bf16.mxu1 %vm2629_vm2, %v3193_v43 }
 0x344   :  { %2379 = vmatprep.subr.bf16.mxu1 %v3193_v43  ;;  %2375 = vmatprep.mubr.msk.bf16.mxu0 %vm2629_vm2, %v3193_v43 }
 0x345   :  { %2385 = vmatprep.subr.bf16.mxu0 %v3193_v43 }
 0x349   :  { %2376 = vmatmul.mubr.msk.bf16.vlgmr.msra.gmra.mxu0 %vm1085_vm5, %v1277_v21 }
 0x34a   :  { %2370 = vmatmul.mubr.msk.bf16.vlgmr.msra.gmra.mxu1 %vm1085_vm5, %v1201_v19  ;;  %2386 = vmatpush3.bf16.msra.mxu0 %v2510_v20 }
 0x34b   :  { %2380 = vmatpush3.bf16.msra.mxu1 %v2509_v11  ;;  %2381 = vmatprep.mubr.msk.bf16.mxu1 %vm2629_vm2, %v3193_v43 }
 0x34c   :  { %2391 = vmatprep.subr.bf16.mxu1 %v3193_v43  ;;  %2387 = vmatprep.mubr.msk.bf16.mxu0 %vm2629_vm2, %v3193_v43 }
 0x34d   :  { %2397 = vmatprep.subr.bf16.mxu0 %v3193_v43 }
 0x351   :  { %2388 = vmatmul.mubr.msk.bf16.vlgmr.msra.gmra.mxu0 %vm1085_vm5, %v1445_v25 }
 0x352   :  { %2382 = vmatmul.mubr.msk.bf16.vlgmr.msra.gmra.mxu1 %vm1085_vm5, %v1369_v28  ;;  %2398 = vmatpush3.bf16.msra.mxu0 %v2512_v26 }
 0x353   :  { %2392 = vmatpush3.bf16.msra.mxu1 %v2511_v27  ;;  %2393 = vmatprep.mubr.msk.bf16.mxu1 %vm2629_vm2, %v3193_v43 }
 0x354   :  { %2403 = vmatprep.subr.bf16.mxu1 %v3193_v43  ;;  %2399 = vmatprep.mubr.msk.bf16.mxu0 %vm2629_vm2, %v3193_v43 }
 0x355   :  { %2409 = vmatprep.subr.bf16.mxu0 %v3193_v43 }
 0x359   :  { %2400 = vmatmul.mubr.msk.bf16.vlgmr.msra.gmra.mxu0 %vm1085_vm5, %v1603_v15 }
 0x35a   :  { %2394 = vmatmul.mubr.msk.bf16.vlgmr.msra.gmra.mxu1 %vm1085_vm5, %v1521_v30  ;;  %2413 = vmatprep.mubr.msk.bf16.mxu0 %vm2629_vm2, %v3193_v43 }
 0x35b   :  { %2404 = vmatpush3.bf16.msra.mxu1 %v2513_v29  ;;  %2405 = vmatprep.mubr.msk.bf16.mxu1 %vm2629_vm2, %v3193_v43 }
 0x35c   :  { %2417 = vmatprep.subr.bf16.mxu1 %v3193_v43 }
 0x362   :  { %2406 = vmatmul.mubr.msk.bf16.vlgmr.msra.gmra.mxu1 %vm1085_vm5, %v1679_v31 }
 0x363   :  { %2427 = vmatprep.mubr.msk.bf16.mxu1 %vm2629_vm2, %v3193_v43 }
 0x3f9   :  { %v1013_v16 = vpop.f32.mrf.mxu0 }
 0x3fb   :  { %v1015_v33 = vpop.f32.mrf.mxu0 }
 0x3fd   :  { %v1016_v14 = vpop.f32.mrf.mxu0 }
 0x3ff   :  { %v1018_v32 = vpop.f32.mrf.mxu0 }
 0x401   :  { %v1169_v34 = vpop.f32.mrf.mxu0 }
 0x402   :  { %v1054_v3 = vpop.f32.mrf.mxu1  ;;  %1176 = vrot.lane.b32.xlu1 %v1169_v34, %s2637_s3 }
 0x403   :  { %v1055_v2 = vadd.f32 %v1054_v3, %v1013_v16  ;;  %v2365_v35 = vpop.f32.mrf.mxu0 }
 0x404   :  { %v2359_v37 = vpop.f32.mrf.mxu1 }
 0x405   :  { %v1062_v38 = vmul.f32 0.00024414063, %v1055_v2  ;;  %v1172_v39 = vpop.f32.mrf.mxu0 }
 0x406   :  { %v1057_v40 = vpop.f32.mrf.mxu1 }
 0x407   :  { %v1066_v47 = vsub.f32 %v1062_v38, %v1064_v36  ;;  %v1058_v41 = vadd.f32 %v1057_v40, %v1016_v14  ;;  %v2366_v24 = vpop.f32.mrf.mxu0 }
 0x408   :  { %v2360_v42 = vpop.f32.mrf.mxu1 }
 0x409   :  { %v1063_v59 = vmul.f32 0.00024414063, %v1058_v41  ;;  %v1321_v44 = vpop.f32.mrf.mxu0  ;;  %v1083_v46 = vmul.f32 %v1066_v47, %v1066_v47  ;;  %v1811_v41 = vld [vmem:[%s3431_s5] sm:$0xff] }
 0x40a   :  { %v1245_v45 = vpop.f32.mrf.mxu1  ;;  %1328 = vrot.lane.b32.xlu1 %v1321_v44, %s2638_s27  ;;  %s3452_s27 = sld [smem:[#allocation21_spill]] }
 0x40b   :  { %v1067_v4 = vsub.f32 %v1063_v59, %v1065_v49  ;;  %1252 = vrot.lane.b32.xlu0 %v1245_v45, %s2635_s1  ;;  %v2377_v48 = vpop.f32.mrf.mxu0  ;;  %v1086_v57 = vsel %vm1085_vm5, %v1083_v46, 0.0  ;;  %s2641_s1 = smov 71  }
 0x40c   :  { %v2371_v51 = vpop.f32.mrf.mxu1 }
 0x40d   :  { %v1084_v52 = vmul.f32 %v1067_v4, %v1067_v4  ;;  %v1324_v53 = vpop.f32.mrf.mxu0 }
 0x40e   :  { %v1248_v56 = vpop.f32.mrf.mxu1 }
 0x40f   :  { %v2378_v55 = vpop.f32.mrf.mxu0  ;;  %v1087_v17 = vsel %vm1085_vm5, %v1084_v52, 0.0 }
 0x410   :  { %v2372_v10 = vpop.f32.mrf.mxu1  ;;  %v3283_v1 = vadd.f32 %v1087_v17, %v1086_v57 }
 0x411   :  { %v1489_v60 = vpop.f32.mrf.mxu0 }
 0x412   :  { %v1413_v18 = vpop.f32.mrf.mxu1  ;;  %1496 = vrot.lane.b32.xlu1 %v1489_v60, %s2639_s10  ;;  %s2649_s10 = smov [#allocation11]  }
 0x413   :  { %1420 = vrot.lane.b32.xlu0 %v1413_v18, %s2640_s22  ;;  %v2389_v61 = vpop.f32.mrf.mxu0  ;;  %s2650_s22 = smov [#allocation9]  }
 0x414   :  { %v2383_v63 = vpop.f32.mrf.mxu1 }
 0x415   :  { %v1492_v7 = vpop.f32.mrf.mxu0 }
 0x416   :  { %v1416_v58 = vpop.f32.mrf.mxu1 }
 0x417   :  { %v2390_v62 = vpop.f32.mrf.mxu0 }
 0x418   :  { %v2384_v0 = vpop.f32.mrf.mxu1 }
 0x419   :  { %v1647_v13 = vpop.f32.mrf.mxu0 }
 0x41a   :  { %v1565_v5 = vpop.f32.mrf.mxu1  ;;  %1654 = vrot.lane.b32.xlu1 %v1647_v13, %s2641_s1 }
 0x41b   :  { %1572 = vrot.lane.b32.xlu0 %v1565_v5, %s2642_s23  ;;  %v2401_v8 = vpop.f32.mrf.mxu0  ;;  %v3328_v5 = vld [vmem:[%s3452_s27] ss:$0 sm:$0xff] }
 0x41c   :  { %v2395_v9 = vpop.f32.mrf.mxu1 }
 0x41d   :  { %v1650_v12 = vpop.f32.mrf.mxu0 }
 0x41e   :  { %v1568_v19 = vpop.f32.mrf.mxu1 }
 0x41f   :  { %v2402_v20 = vpop.f32.mrf.mxu0 }
 0x420   :  { %v2396_v11 = vpop.f32.mrf.mxu1 }
 0x422   :  { %v1723_v21 = vpop.f32.mrf.mxu1 }
 0x423   :  { %1730 = vrot.lane.b32.xlu0 %v1723_v21, %s2643_s25 }
 0x424   :  { %v2407_v22 = vpop.f32.mrf.mxu1 }
 0x426   :  { %v1726_v23 = vpop.f32.mrf.mxu1 }
 0x427   :  { %v1963_v23 = vld [vmem:[%s3433_s7] sm:$0xff] }
 0x428   :  { %v2408_v25 = vpop.f32.mrf.mxu1 }
 0x429   :  { %v2532_v25 = vld [vmem:[%s3433_s7 + $0x8] sm:$0xff] }
 0x474   :  { %v1177_v26 = vpop.permute.xlu1 %1176 }
 0x475   :  { %1180 = vst.msk [vmem:[#allocation2 + $0x4] sm:$0x7] %vm1179_vm12, %v1177_v26  ;;  %vm1753_vm12 = vcmask 80896   ;;  %v970_v26 = vmul.f32 0.00048828125, %v3203_v54 }
 0x47c   :  { %v1329_v27 = vpop.permute.xlu1 %1328 }
 0x47d   :  { %v1253_v28 = vpop.permute.xlu0 %1252 }
 0x47e   :  { %1256 = vst.msk [vmem:[#allocation2 + $0x4] sm:$0x7] %vm1255_vm13, %v1253_v28  ;;  %vm1764_vm13 = vcmask 72704  }
 0x47f   :  { %1332 = vst.msk [vmem:[#allocation2 + $0x4] sm:$0x7] %vm1331_vm14, %v1329_v27  ;;  %vm1872_vm14 = vcmask 1048352   ;;  %v971_v27 = vld [vmem:[%s3435_s9] sm:$0xff] }
 0x480   :  { %1873 = vst.msk [vmem:[#allocation4 + $0x8] sm:$0xff] %vm1872_vm14, %v3193_v43  ;;  %v972_v28 = vsub.f32 %v970_v26, %v971_v27 }
 0x484   :  { %v1497_v29 = vpop.permute.xlu1 %1496 }
 0x485   :  { %v1421_v15 = vpop.permute.xlu0 %1420 }
 0x486   :  { %1424 = vst.msk [vmem:[#allocation2 + $0x4] sm:$0x7] %vm1423_vm15, %v1421_v15  ;;  %vm1874_vm15 = vcmask 818176   ;;  %v1068_v15 = vmul.f32 %v972_v28, %v972_v28 }
 0x487   :  { %1500 = vst.msk [vmem:[#allocation2 + $0x4] sm:$0x7] %vm1499_vm4, %v1497_v29 }
 0x48c   :  { %v1655_v30 = vpop.permute.xlu1 %1654 }
 0x48d   :  { %v1573_v31 = vpop.permute.xlu0 %1572 }
 0x48e   :  { %1576 = vst.msk [vmem:[#allocation2 + $0x4] sm:$0x7] %vm1575_vm6, %v1573_v31 }
 0x48f   :  { %1658 = vst.msk [vmem:[#allocation2 + $0x4] sm:$0x7] %vm1657_vm7, %v1655_v30 }
 0x495   :  { %v1731_v16 = vpop.permute.xlu0 %1730 }
 0x496   :  { %1734 = vst.msk [vmem:[#allocation2 + $0x4] sm:$0x7] %vm1733_vm8, %v1731_v16 }
 0x49d   :  { %v1778_v33 = vld [vmem:[#allocation2 + $0x4] sm:$0x7] }
 0x49e   :  { %v1786_v14 = vld [vmem:[#allocation2 + $0x4] sm:$0x7]  ;;  %1779 = vst.msk [vmem:[#allocation7 + $0xc] sm:$0x7] %vm1103_vm11, %v1778_v33 }
 0x49f   :  { %v1780_v32 = vld [vmem:[#allocation2 + $0x4] sm:$0x7]  ;;  %1788 = vrot.lane.b32.xlu0 %v1786_v14, %s2644_s14 }
 0x4a0   :  { %1782 = vrot.lane.b32.xlu1 %v1780_v32, %s2621_s24  ;;  %v1798_v34 = vld [vmem:[#allocation2 + $0x4] sm:$0x7] }
 0x4a1   :  { %v1792_v3 = vld [vmem:[#allocation2 + $0x4] sm:$0x7] }
 0x4a2   :  { %v1735_v2 = vld [vmem:[#allocation2] sm:$0x77] }
 0x4a3   :  { %1800 = vrot.lane.b32.xlu0 %v1798_v34, %s2645_s19  ;;  %v1737_v35 = vcombine.high %v1735_v2, %v1735_v2  ;;  %v1746_v36 = vld [vmem:[#allocation2] sm:$0x77] }
 0x4a4   :  { %1794 = vrot.lane.b32.xlu1 %v1792_v3, %s2646_s0  ;;  %v1748_v37 = vcombine.high %v1746_v36, %v1746_v36  ;;  %v1757_v38 = vld [vmem:[#allocation2] sm:$0x77] }
 0x4a5   :  { %v1759_v39 = vcombine.high %v1757_v38, %v1757_v38  ;;  %v1768_v40 = vld [vmem:[#allocation2] sm:$0x77] }
 0x4a6   :  { %v1770_v47 = vcombine.high %v1768_v40, %v1768_v40 }
 0x4a7   :  { %1740 = vrot.lane.b32.xlu0 %v1737_v35, %s2637_s3 }
 0x4a8   :  { %1738 = vrot.lane.b32.xlu1 %v1735_v2, %s2637_s3 }
 0x4ab   :  { %1751 = vrot.lane.b32.xlu0 %v1748_v37, %s2647_s21 }
 0x4ac   :  { %1749 = vrot.lane.b32.xlu1 %v1746_v36, %s2647_s21 }
 0x4af   :  { %1762 = vrot.lane.b32.xlu0 %v1759_v39, %s2648_s2 }
 0x4b0   :  { %1760 = vrot.lane.b32.xlu1 %v1757_v38, %s2648_s2 }
 0x4b3   :  { %1773 = vrot.lane.b32.xlu0 %v1770_v47, %s2627_s20 }
 0x4b4   :  { %1771 = vrot.lane.b32.xlu1 %v1768_v40, %s2627_s20 }
 0x4b7   :  { %1903 = vrot.lane.b32.xlu0 %v3193_v43, %s2648_s2 }
 0x4b8   :  { %1814 = vperm.xlu1 %2490, %v1811_v41  }
 0x511   :  { %v1789_v24 = vpop.permute.xlu0 %1788 }
 0x512   :  { %v1783_v49 = vpop.permute.xlu1 %1782  ;;  %1791 = vst.msk [vmem:[#allocation7 + $0x12] sm:$0x7] %vm1103_vm11, %v1789_v24 }
 0x513   :  { %1785 = vst.msk [vmem:[#allocation7 + $0xf] sm:$0x7] %vm1103_vm11, %v1783_v49 }
 0x515   :  { %v1801_v42 = vpop.permute.xlu0 %1800 }
 0x516   :  { %v1795_v59 = vpop.permute.xlu1 %1794  ;;  %1803 = vst.msk [vmem:[#allocation7 + $0x18] sm:$0x7] %vm1103_vm11, %v1801_v42 }
 0x517   :  { %1797 = vst.msk [vmem:[#allocation7 + $0x15] sm:$0x7] %vm1103_vm11, %v1795_v59 }
 0x519   :  { %v1741_v45 = vpop.permute.xlu0 %1740 }
 0x51a   :  { %v1739_v44 = vpop.permute.xlu1 %1738 }
 0x51b   :  { %v1743_v46 = vsel %vm1742_vm10, %v1739_v44, %v1741_v45 }
 0x51c   :  { %1745 = vst.msk [vmem:[#allocation7] sm:$0x7] %vm1103_vm11, %v1743_v46 }
 0x51d   :  { %v1752_v48 = vpop.permute.xlu0 %1751  ;;  %v1808_v52 = vld [vmem:[#allocation7 + $0x18] sm:$0x7] }
 0x51e   :  { %v1750_v4 = vpop.permute.xlu1 %1749  ;;  %v1807_v51 = vld [vmem:[#allocation7 + $0x10] sm:$0xff] }
 0x51f   :  { %v1754_v53 = vsel %vm1753_vm12, %v1750_v4, %v1752_v48  ;;  %v1810_v56 = vpack.c.bf16 %v1808_v52, %v1807_v51 }
 0x520   :  { %1756 = vst.msk [vmem:[#allocation7 + $0x3] sm:$0x7] %vm1103_vm11, %v1754_v53  ;;  %v2518_v53 = vld [vmem:[%s3432_s6] sm:$0xff]  }
 0x521   :  { %v1821_v55 = vand.u32 %v1810_v56, %v2897_v50  ;;  %v1763_v17 = vpop.permute.xlu0 %1762  ;;  %v1804_v50 = vld [vmem:[%s3430_s4] sm:$0xf] }
 0x522   :  { %v1761_v57 = vpop.permute.xlu1 %1760 }
 0x523   :  { %v1765_v10 = vsel %vm1764_vm13, %v1761_v57, %v1763_v17  ;;  %2410 = vmatpush3.bf16.msra.mxu0 %v1821_v55 }
 0x524   :  { %1767 = vst.msk [vmem:[#allocation7 + $0x6] sm:$0x7] %vm1103_vm11, %v1765_v10  ;;  %2411 = vmatprep.subr.bf16.mxu0 %v3193_v43 }
 0x525   :  { %v1774_v18 = vpop.permute.xlu0 %1773 }
 0x526   :  { %v1772_v60 = vpop.permute.xlu1 %1771 }
 0x527   :  { %v1775_v61 = vsel %vm217_vm1, %v1772_v60, %v1774_v18 }
 0x528   :  { %1777 = vst.msk [vmem:[#allocation7 + $0x9] sm:$0x7] %vm1103_vm11, %v1775_v61 }
 0x529   :  { %v1904_v30 = vpop.permute.xlu0 %1903 }
 0x52b   :  { %v1805_v63 = vld [vmem:[#allocation7] sm:$0xff] }
 0x52f   :  { %v1806_v7 = vld [vmem:[#allocation7 + $0x8] sm:$0xff] }
 0x530   :  { %v1809_v58 = vpack.c.bf16 %v1806_v7, %v1805_v63 }
 0x532   :  { %2412 = vmatpush3.bf16.msra.mxu0 %v1809_v58 }
 0x533   :  { %2431 = vmatprep.subr.bf16.mxu0 %v3193_v43  ;;  %v1815_v62 = vpop.permute.xlu1 %1814 }
 0x535   :  { %2414 = vmatmul.mubr.msk.bf16.vlgmr.msra.gmra.mxu0 %vm361_vm0, %v1804_v50 }
 0x536   :  { %2433 = vmatprep.mubr.msk.bf16.mxu0 %vm2629_vm2, %v3193_v43 }
 0x5f5   :  { %v1857_v0 = vpop.f32.mrf.mxu0 }
 0x5f6   :  { %v1858_v13 = vadd.f32 %v1857_v0, %v1815_v62 }
 0x5f7   :  { %v2415_v8 = vpop.f32.mrf.mxu0 }
 0x5f8   :  { %v1863_v9 = vmax.f32 %v1858_v13, 0.0 }
 0x5f9   :  { %v1860_v12 = vpop.f32.mrf.mxu0 }
 0x5fa   :  { %v1870_v19 = vmul.f32 %v3328_v5, %v1863_v9 }
 0x5fb   :  { %v2416_v20 = vpop.f32.mrf.mxu0 }
 0x5fc   :  { %1876 = vst.msk [vmem:[#allocation4 + $0x8] sm:$0xff] %vm1874_vm15, %v1870_v19  ;;  %v2052_v11 = vpack.c.bf16 %v1870_v19, %v1870_v19 }
 0x5fe   :  { %v2054_v21 = vsel %vm1874_vm15, %v2052_v11, 0 }
 0x5ff   :  { %2432 = vmatpush3.bf16.xpose.msra.mxu0 %v2054_v21 }
 0x600   :  { %2437 = vmatprep.subr.bf16.mxu0 %v3193_v43 }
 0x603   :  { %v1921_v22 = vld [vmem:[#allocation4 + $0x8] sm:$0xff] }
 0x604   :  { %1922 = vst.msk [vmem:[#allocation8 + $0x20] sm:$0xff] %vm1874_vm15, %v1921_v22  ;;  %1943 = vrot.lane.b32.xlu0 %v1921_v22, %s2645_s19  ;;  %1931 = vrot.lane.b32.xlu1 %v1921_v22, %s2644_s14 }
 0x606   :  { %2434 = vmatmul.mubr.msk.bf16.vlgmr.msra.gmra.mxu0 %vm1874_vm15, %v2052_v11 }
 0x607   :  { %2439 = vmatprep.mubr.msk.bf16.mxu0 %vm2629_vm2, %v3193_v43  ;;  %vm1069_vm2 = vcmask 64512  }
 0x608   :  { %1937 = vrot.lane.b32.xlu0 %v1921_v22, %s2646_s0  ;;  %1925 = vrot.lane.b32.xlu1 %v1921_v22, %s2621_s24  ;;  %v1070_v29 = vsel %vm1069_vm2, %v1068_v15, 0.0  ;;  %s2211_s24 = sshll.u32 %s2649_s10, 4  ;;  %s2212_s24 = int_to_ptr.vmem [resolvable:$true] %s2211_s24 }
 0x609   :  { %s2537_s1 = scalar_lea.vmem %s2212_s24, 32  ;;  %p2538_p1 = scmp.lt.s32.totalorder %s2212_s24, %s2212_s24 }
 0x60b   :  { %v1953_v24 = vld [vmem:[#allocation8 + $0x20] sm:$0xff] }
 0x60c   :  { %1914 = vrot.lane.b32.xlu0 %v3193_v43, %s2627_s20  ;;  %1905 = vrot.lane.b32.xlu1 %v1921_v22, %s2648_s2 }
 0x610   :  { %1881 = vrot.lane.b32.xlu0 %v3193_v43, %s2637_s3  ;;  %1916 = vrot.lane.b32.xlu1 %v1921_v22, %s2627_s20  ;;  %s2533_s20 = scalar_lea.vmem %s2212_s24, 16 }
 0x611   :  { %p2534_p0 = scmp.ne.s32.totalorder %s2212_s24, %s2533_s20  ;;  %p2539_p2 = scmp.lt.s32.totalorder %s2537_s1, %s2533_s20 }
 0x613   :  { %p2540_p3 = por %p2539_p2, %p2538_p1 }
 0x614   :  { %1892 = vrot.lane.b32.xlu0 %v3193_v43, %s2647_s21  ;;  %1883 = vrot.lane.b32.xlu1 %v1921_v22, %s2637_s3 }
 0x615   :  { %p2541_p4 = pnand %p2540_p3, %p2534_p0 }
 0x618   :  { %1967 = vperm.xlu0 %2489, %v1963_v23   ;;  %1894 = vrot.lane.b32.xlu1 %v1921_v22, %s2647_s21 }
 0x61c   :  { %1972 = vperm.xlu1 %2490, %v2532_v25  }
 0x637   :  { %871 = vadd.xlane.f32.xlu0 %v3221_v6 }
 0x63b   :  { %1089 = vadd.xlane.f32.xlu0 %v3283_v1 }
 0x640   :  { %1071 = vadd.xlane.f32.xlu1 %v1070_v29 }
 0x676   :  { %v1932_v31 = vpop.permute.xlu1 %1931  ;;  %v1944_v16 = vpop.permute.xlu0 %1943 }
 0x677   :  { %1934 = vst.msk [vmem:[#allocation8 + $0x30] sm:$0xff] %vm1874_vm15, %v1932_v31  ;;  %1946 = vst.msk [vmem:[#allocation8 + $0x40] sm:$0xff] %vm1874_vm15, %v1944_v16 }
 0x67a   :  { %v1926_v54 = vpop.permute.xlu1 %1925  ;;  %v1938_v33 = vpop.permute.xlu0 %1937 }
 0x67b   :  { %1928 = vst.msk [vmem:[#allocation8 + $0x28] sm:$0xff] %vm1874_vm15, %v1926_v54  ;;  %1940 = vst.msk [vmem:[#allocation8 + $0x38] sm:$0xff] %vm1874_vm15, %v1938_v33 }
 0x67e   :  { %v1906_v6 = vpop.permute.xlu1 %1905  ;;  %v1957_v14 = vld [vmem:[#allocation8 + $0x40] sm:$0xff]  ;;  %v1915_v1 = vpop.permute.xlu0 %1914  ;;  %v1955_v35 = vld [vmem:[#allocation8 + $0x30] sm:$0xff] }
 0x67f   :  { %v1907_v32 = vsel %vm1764_vm13, %v1904_v30, %v1906_v6  ;;  %v1962_v34 = vpack.c.bf16 %v1957_v14, %v1957_v14 }
 0x680   :  { %1909 = vst.msk [vmem:[#allocation8 + $0x10] sm:$0xff] %vm1874_vm15, %v1907_v32 }
 0x681   :  { %v1984_v3 = vsel %vm740_vm3, %v1962_v34, 0 }
 0x682   :  { %v1917_v2 = vpop.permute.xlu1 %1916  ;;  %2418 = vmatpush3.bf16.msra.mxu1 %v1984_v3  ;;  %v1956_v36 = vld [vmem:[#allocation8 + $0x38] sm:$0xff]  ;;  %v1882_v37 = vpop.permute.xlu0 %1881  ;;  %v1954_v40 = vld [vmem:[#allocation8 + $0x28] sm:$0xff] }
 0x683   :  { %v1918_v38 = vsel %vm217_vm1, %v1915_v1, %v1917_v2  ;;  %2419 = vmatprep.subr.bf16.mxu1 %v3193_v43  ;;  %v1961_v39 = vpack.c.bf16 %v1956_v36, %v1955_v35  ;;  %v1960_v49 = vpack.c.bf16 %v1954_v40, %v1953_v24  ;;  %vm2185_vm1 = vcmask 0   ;;  %v2031_v1 = vld [vmem:[%s3437_s11] sm:$0xff] }
 0x684   :  { %1920 = vst.msk [vmem:[#allocation8 + $0x18] sm:$0xff] %vm1874_vm15, %v1918_v38 }
 0x686   :  { %v1884_v47 = vpop.permute.xlu1 %1883  ;;  %2420 = vmatpush3.bf16.msra.mxu1 %v1961_v39  ;;  %v1893_v42 = vpop.permute.xlu0 %1892 }
 0x687   :  { %v1885_v41 = vsel %vm1742_vm10, %v1882_v37, %v1884_v47  ;;  %2421 = vmatprep.subr.bf16.mxu1 %v3193_v43  ;;  %v1951_v45 = vld [vmem:[#allocation8 + $0x10] sm:$0xff]  ;;  %v2032_v37 = vld [vmem:[%s3437_s11 + $0x8] sm:$0xff] }
 0x688   :  { %1887 = vst.msk [vmem:[#allocation8] sm:$0xff] %vm1874_vm15, %v1885_v41 }
 0x68a   :  { %v1895_v59 = vpop.permute.xlu1 %1894  ;;  %2422 = vmatpush3.bf16.msra.mxu1 %v1960_v49 }
 0x68b   :  { %v1896_v44 = vsel %vm1753_vm12, %v1893_v42, %v1895_v59  ;;  %2423 = vmatprep.subr.bf16.mxu1 %v3193_v43  ;;  %v1952_v46 = vld [vmem:[#allocation8 + $0x18] sm:$0xff] }
 0x68c   :  { %1898 = vst.msk [vmem:[#allocation8 + $0x8] sm:$0xff] %vm1874_vm15, %v1896_v44  ;;  %v1959_v4 = vpack.c.bf16 %v1952_v46, %v1951_v45 }
 0x68e   :  { %2424 = vmatpush3.bf16.msra.mxu1 %v1959_v4 }
 0x68f   :  { %2425 = vmatprep.subr.bf16.mxu1 %v3193_v43  ;;  %v1949_v48 = vld [vmem:[#allocation8] sm:$0xff] }
 0x690   :  { %v2098_v43 = vld [vmem:[%s3438_s12] sm:$0xff] }
 0x693   :  { %v1950_v51 = vld [vmem:[#allocation8 + $0x8] sm:$0xff]  ;;  %v1968_v56 = vpop.permute.xlu0 %1967 }
 0x694   :  { %v1958_v52 = vpack.c.bf16 %v1950_v51, %v1949_v48 }
 0x696   :  { %2426 = vmatpush3.bf16.msra.mxu1 %v1958_v52 }
 0x697   :  { %v1973_v60 = vpop.permute.xlu1 %1972 }
 0x699   :  { %2428 = vmatmul.mubr.msk.bf16.vlgmr.msra.gmra.mxu1 %vm736_vm9, %v2518_v53 }
 0x6c0   :  { %v872_v55 = vpop.xlane.xlu0 %871 }
 0x6c1   :  { %v873_v57 = vrot.slane %v872_v55, 4 }
 0x6c3   :  { %v874_v17 = vadd.f32 %v873_v57, %v872_v55 }
 0x6c4   :  { %v1090_v10 = vpop.xlane.xlu0 %1089 }
 0x6c5   :  { %v875_v18 = vrot.slane %v874_v17, 2  ;;  %v1091_v61 = vrot.slane %v1090_v10, 4 }
 0x6c6   :  { %v2090_v63 = vpop.f32.mrf.mxu0 }
 0x6c7   :  { %v1092_v7 = vadd.f32 %v1091_v61, %v1090_v10  ;;  %v2097_v58 = vmul.f32 0.001953125, %v2090_v63  ;;  %v876_v50 = vadd.f32 %v875_v18, %v874_v17  ;;  %v2148_v18 = vld [vmem:[%s3439_s13] sm:$0xff] }
 0x6c8   :  { %v2435_v62 = vpop.f32.mrf.mxu0 }
 0x6c9   :  { %v1093_v0 = vrot.slane %v1092_v7, 2  ;;  %v2099_v13 = vsub.f32 %v2097_v58, %v2098_v43  ;;  %v1072_v8 = vpop.xlane.xlu1 %1071  ;;  %v877_v9 = vrot.slane %v876_v50, 1  ;;  %v2149_v58 = vld [vmem:[%s3439_s13 + $0x8] sm:$0xff]  ;;  %s2201_s13 = sshll.u32 %s2650_s22, 4  ;;  %s2202_s13 = int_to_ptr.vmem [resolvable:$true] %s2201_s13 }
 0x6ca   :  { %v1073_v12 = vrot.slane %v1072_v8, 4  ;;  %v2093_v19 = vpop.f32.mrf.mxu0 }
 0x6cb   :  { %v2152_v20 = vmul.f32 %v2099_v13, %v2099_v13  ;;  %v878_v11 = vadd.f32 %v877_v9, %v876_v50  ;;  %v1094_v25 = vadd.f32 %v1093_v0, %v1092_v7 }
 0x6cc   :  { %v1074_v21 = vadd.f32 %v1073_v12, %v1072_v8  ;;  %v2436_v22 = vpop.f32.mrf.mxu0 }
 0x6cd   :  { %2443 = vpush %v878_v11  ;;  %v2153_v23 = vsel %vm1069_vm2, %v2152_v20, 0.0  ;;  %v1095_v28 = vrot.slane %v1094_v25, 1 }
 0x6ce   :  { %v1075_v26 = vrot.slane %v1074_v21, 2  ;;  %2154 = vadd.xlane.f32.xlu1 %v2153_v23 }
 0x6cf   :  { %v1096_v30 = vadd.f32 %v1095_v28, %v1094_v25 }
 0x6d0   :  { %v1076_v27 = vadd.f32 %v1075_v26, %v1074_v21 }
 0x6d2   :  { %v1077_v15 = vrot.slane %v1076_v27, 1 }
 0x6d4   :  { %v1078_v29 = vadd.f32 %v1077_v15, %v1076_v27 }
 0x6d6   :  { %2445 = vpush %v1078_v29 }
 0x6d7   :  { %2447 = vpush %v1096_v30 }
 0x6fe   :  { %s2444_s6 = spop %2443 }
 0x6ff   :  { %s882_s12 = smul.f32 0.00024414063, %s2444_s6 }
 0x701   :  { %v2184_v31 = vstv %s882_s12 }
 0x702   :  { %2186 = vst.msk [vmem:[#allocation9] sm:$0x1] %vm2185_vm1, %v2184_v31 }
 0x707   :  { %s2446_s25 = spop %2445 }
 0x708   :  { %s1082_s14 = smul.f32 0.015625, %s2446_s25  ;;  %s2448_s19 = spop %2447 }
 0x709   :  { %s1100_s0 = smul.f32 0.00390625, %s2448_s19 }
 0x70b   :  { %s1101_s21 = sadd.f32 %s1100_s0, %s1082_s14 }
 0x70d   :  { %v2187_v16 = vstv %s1101_s21 }
 0x70e   :  { %2188 = vst.msk [vmem:[#allocation11] sm:$0x1] %vm2185_vm1, %v2187_v16 }
 0x757   :  { %v2155_v44 = vpop.xlane.xlu1 %2154 }
 0x758   :  { %v2156_v45 = vrot.slane %v2155_v44, 4 }
 0x759   :  { %v2020_v54 = vpop.f32.mrf.mxu1 }
 0x75a   :  { %v2021_v33 = vadd.f32 %v2020_v54, %v1968_v56  ;;  %v2157_v46 = vadd.f32 %v2156_v45, %v2155_v44 }
 0x75b   :  { %v2429_v6 = vpop.f32.mrf.mxu1 }
 0x75c   :  { %v2027_v14 = vmax.f32 %v2021_v33, 0.0  ;;  %v2158_v4 = vrot.slane %v2157_v46, 2 }
 0x75d   :  { %v2023_v32 = vpop.f32.mrf.mxu1 }
 0x75e   :  { %v2029_v34 = vmul.f32 %v3328_v5, %v2027_v14  ;;  %v2024_v3 = vadd.f32 %v2023_v32, %v1973_v60  ;;  %v2159_v52 = vadd.f32 %v2158_v4, %v2157_v46 }
 0x75f   :  { %v2430_v2 = vpop.f32.mrf.mxu1 }
 0x760   :  { %v2033_v35 = vsub.f32 %v2029_v34, %v2031_v1  ;;  %v2028_v36 = vmax.f32 %v2024_v3, 0.0  ;;  %v2160_v55 = vrot.slane %v2159_v52, 1 }
 0x762   :  { %v2030_v38 = vmul.f32 %v3328_v5, %v2028_v36  ;;  %v2035_v39 = vmul.f32 %v2033_v35, %v2033_v35  ;;  %v2161_v10 = vadd.f32 %v2160_v55, %v2159_v52 }
 0x764   :  { %v2034_v40 = vsub.f32 %v2030_v38, %v2032_v37  ;;  %v2100_v47 = vpack.c.bf16 %v2030_v38, %v2029_v34  ;;  %v2037_v49 = vsel %vm1874_vm15, %v2035_v39, 0.0 }
 0x766   :  { %v2036_v41 = vmul.f32 %v2034_v40, %v2034_v40  ;;  %v2102_v24 = vsel %vm1874_vm15, %v2100_v47, 0 }
 0x767   :  { %2438 = vmatpush3.bf16.xpose.msra.mxu0 %v2102_v24 }
 0x768   :  { %v2038_v42 = vsel %vm1874_vm15, %v2036_v41, 0.0 }
 0x769   :  { %v2039_v59 = vadd.f32 %v2038_v42, %v2037_v49 }
 0x76b   :  { %2040 = vadd.xlane.f32.xlu0 %v2039_v59 }
 0x76e   :  { %2440 = vmatmul.mubr.msk.bf16.vlgmr.msra.gmra.mxu0 %vm1874_vm15, %v2100_v47 }
 0x7f4   :  { %v2041_v5 = vpop.xlane.xlu0 %2040 }
 0x7f5   :  { %v2042_v48 = vrot.slane %v2041_v5, 4 }
 0x7f7   :  { %v2043_v51 = vadd.f32 %v2042_v48, %v2041_v5 }
 0x7f9   :  { %v2044_v53 = vrot.slane %v2043_v51, 2 }
 0x7fb   :  { %v2045_v56 = vadd.f32 %v2044_v53, %v2043_v51 }
 0x7fd   :  { %v2046_v57 = vrot.slane %v2045_v56, 1 }
 0x7ff   :  { %v2047_v17 = vadd.f32 %v2046_v57, %v2045_v56 }
 0x801   :  { %2449 = vpush %v2047_v17 }
 0x802   :  { %2451 = vpush %v2161_v10 }
 0x82e   :  { %v2138_v60 = vpop.f32.mrf.mxu0 }
 0x82f   :  { %v2146_v61 = vmul.f32 0.0009765625, %v2138_v60 }
 0x830   :  { %v2441_v63 = vpop.f32.mrf.mxu0 }
 0x831   :  { %v2150_v43 = vsub.f32 %v2146_v61, %v2148_v18 }
 0x832   :  { %s2450_s29 = spop %2449  ;;  %v2141_v7 = vpop.f32.mrf.mxu0 }
 0x833   :  { %s2051_s4 = smul.f32 0.0009765625, %s2450_s29  ;;  %v2147_v50 = vmul.f32 0.0009765625, %v2141_v7  ;;  %v2166_v0 = vmul.f32 %v2150_v43, %v2150_v43 }
 0x834   :  { %v2442_v62 = vpop.f32.mrf.mxu0 }
 0x835   :  { %v2189_v13 = vstv %s2051_s4  ;;  %v2151_v8 = vsub.f32 %v2147_v50, %v2149_v58  ;;  %v2168_v12 = vsel %vm1085_vm5, %v2166_v0, 0.0 }
 0x836   :  { %2190 = vst.msk [vmem:[#allocation13] sm:$0x1] %vm2185_vm1, %v2189_v13 }
 0x837   :  { %v2167_v9 = vmul.f32 %v2151_v8, %v2151_v8 }
 0x839   :  { %v2169_v19 = vsel %vm1085_vm5, %v2167_v9, 0.0 }
 0x83a   :  { %v2170_v20 = vadd.f32 %v2169_v19, %v2168_v12 }
 0x83c   :  { %2171 = vadd.xlane.f32.xlu0 %v2170_v20 }
 0x83d   :  { %2544 = shalt.err (!%p2541_p4)
}
 0x83e   :  { %2214 = dma.vmem_to_hbm [thread:$0]  %s2212_s24, 16, %s3442_s16, [#allocation12]  }
 0x83f   :  { %s2553_s3 = scalar_lea.vmem %s2202_s13, 16  ;;  %s2557_s23 = scalar_lea.vmem %s2202_s13, 32 }
 0x840   :  { %p2554_p5 = scmp.ne.s32.totalorder %s2202_s13, %s2553_s3  ;;  %p2558_p6 = scmp.lt.s32.totalorder %s2202_s13, %s2202_s13 }
 0x841   :  { %p2559_p7 = scmp.lt.s32.totalorder %s2557_s23, %s2553_s3 }
 0x843   :  { %p2560_p8 = por %p2559_p7, %p2558_p6 }
 0x845   :  { %p2561_p9 = pnand %p2560_p8, %p2554_p5 }
 0x847   :  { %2564 = shalt.err (!%p2561_p9)
}
 0x848   :  { %2204 = dma.vmem_to_hbm [thread:$0]  %s2202_s13, 16, %s3441_s15, [#allocation10]  }
 0x849   :  { %s2651_s25 = smov [#allocation13]  }
 0x84a   :  { %s2221_s14 = sshll.u32 %s2651_s25, 4  ;;  %s2222_s14 = int_to_ptr.vmem [resolvable:$true] %s2221_s14 }
 0x84b   :  { %s2573_s19 = scalar_lea.vmem %s2222_s14, 16  ;;  %s2577_s0 = scalar_lea.vmem %s2222_s14, 32 }
 0x84c   :  { %p2574_p10 = scmp.ne.s32.totalorder %s2222_s14, %s2573_s19  ;;  %p2578_p11 = scmp.lt.s32.totalorder %s2222_s14, %s2222_s14 }
 0x84d   :  { %p2579_p12 = scmp.lt.s32.totalorder %s2577_s0, %s2573_s19 }
 0x84f   :  { %p2580_p13 = por %p2579_p12, %p2578_p11 }
 0x851   :  { %p2581_p0 = pnand %p2580_p13, %p2574_p10 }
 0x853   :  { %2584 = shalt.err (!%p2581_p0)
}
 0x854   :  { %2224 = dma.vmem_to_hbm [thread:$0]  %s2222_s14, 16, %s3443_s17, [#allocation12]  }
 0x855   :  { %s2452_s15 = spop %2451  ;;  %s2652_s5 = smov [#allocation14]  }
 0x856   :  { %s2165_s2 = smul.f32 0.015625, %s2452_s15  ;;  %s2231_s11 = sshll.u32 %s2652_s5, 4  ;;  %s2232_s11 = int_to_ptr.vmem [resolvable:$true] %s2231_s11 }
 0x857   :  { %s2593_s17 = scalar_lea.vmem %s2232_s11, 16  ;;  %s2597_s29 = scalar_lea.vmem %s2232_s11, 32 }
 0x858   :  { %p2594_p1 = scmp.ne.s32.totalorder %s2232_s11, %s2593_s17  ;;  %p2598_p2 = scmp.lt.s32.totalorder %s2232_s11, %s2232_s11 }
 0x859   :  { %p2599_p3 = scmp.lt.s32.totalorder %s2597_s29, %s2593_s17 }
 0x85b   :  { %p2600_p4 = por %p2599_p3, %p2598_p2 }
 0x85d   :  { %p2601_p5 = pnand %p2600_p4, %p2594_p1 }
 0x8c5   :  { %v2172_v11 = vpop.xlane.xlu0 %2171 }
 0x8c6   :  { %v2173_v21 = vrot.slane %v2172_v11, 4 }
 0x8c8   :  { %v2174_v22 = vadd.f32 %v2173_v21, %v2172_v11 }
 0x8ca   :  { %v2175_v23 = vrot.slane %v2174_v22, 2 }
 0x8cc   :  { %v2176_v25 = vadd.f32 %v2175_v23, %v2174_v22 }
 0x8ce   :  { %v2177_v26 = vrot.slane %v2176_v25, 1 }
 0x8d0   :  { %v2178_v27 = vadd.f32 %v2177_v26, %v2176_v25 }
 0x8d2   :  { %2453 = vpush %v2178_v27 }
 0x903   :  { %s2454_s26 = spop %2453 }
 0x904   :  { %s2182_s8 = smul.f32 0.00390625, %s2454_s26 }
 0x906   :  { %s2183_s28 = sadd.f32 %s2182_s8, %s2165_s2 }
 0x908   :  { %v2191_v28 = vstv %s2183_s28 }
 0x909   :  { %2192 = vst.msk [vmem:[#allocation14] sm:$0x1] %vm2185_vm1, %v2191_v28 }
 0x90a   :  { %2604 = shalt.err (!%p2601_p5)
}
 0x90b   :  { %2234 = dma.vmem_to_hbm [thread:$0]  %s2232_s11, 16, %s3444_s18, [#allocation15]  }
 0x90c   :  { %2613 = dma.done.wait [#allocation10], 16  }
 0x90d   :  { %2614 = vsyncadd [#allocation10], 4294967280 }
 0x90e   :  { %2615 = dma.done.wait [#allocation12], 32  }
 0x90f   :  { %2616 = vsyncadd [#allocation12], 4294967264 }
 0x910   :  { %2617 = dma.done.wait [#allocation15], 16  }
 0x911   :  { %2618 = vsyncadd [#allocation15], 4294967280 }
 0x912   :  { %2249 = vsyncpa [#allocation10], 1 }
 0x913   :  { %2250 = vsyncpa [#allocation12], 1 }
 0x914   :  { %2251 = vsyncpa [#allocation15], 1 }

</bundles_post_ra>
